<compile_context>
chip_gen: v6e
topology: v6e:2x2x1
jax: 0.10.0
libtpu: 0.0.40
codegen_flags: <defaults>
</compile_context>

<pallas_src>
import functools

import jax
import jax.numpy as jnp
from jax import lax
from jax.experimental import pallas as pl
from jax.experimental.pallas import tpu as pltpu


def da1_kernel(xq_ref, xk_ref, wt_ref, wpg_ref, wo_ref,
               w1_ref, b1_ref, w2_ref,
               o_ref,
               m_sc, l_sc, acc_sc, pooled_sc,
               *, c8, inv_hw):
    ki = pl.program_id(2)
    nk = pl.num_programs(2)

    @pl.when(ki == 0)
    def _():
        m_sc[...] = jnp.full_like(m_sc, -jnp.inf)
        l_sc[...] = jnp.zeros_like(l_sc)
        acc_sc[...] = jnp.zeros_like(acc_sc)
        pooled_sc[...] = jnp.zeros_like(pooled_sc)

    xq = xq_ref[0]                          # (TQ, C)  f32
    xk = xk_ref[0]                          # (TK, C)  f32
    xq_b = xq.astype(jnp.bfloat16)
    xk_b = xk.astype(jnp.bfloat16)

    # --- fused 1x1-conv projections (bf16 MXU operands, f32 accumulation) ---
    theta = jnp.dot(xq_b, wt_ref[...],
                    preferred_element_type=jnp.float32)        # (TQ, C/8)
    pg = jnp.dot(xk_b, wpg_ref[...],
                 preferred_element_type=jnp.float32)           # (TK, C/8 + C/2)
    phi = pg[:, :c8]                                           # (TK, C/8)
    g = pg[:, c8:]                                             # (TK, C/2)

    # scores = theta @ phi^T, contracting last axes directly (no transpose copy)
    scores = lax.dot_general(theta.astype(jnp.bfloat16), phi.astype(jnp.bfloat16),
                             (((1,), (1,)), ((), ())),
                             preferred_element_type=jnp.float32)   # (TQ, TK)

    # --- online softmax (f32) ---
    m_prev = m_sc[...]
    m_new = jnp.maximum(m_prev, jnp.max(scores, axis=-1, keepdims=True))
    alpha = jnp.exp(m_prev - m_new)
    p = jnp.exp(scores - m_new)                                    # (TQ, TK)
    l_sc[...] = alpha * l_sc[...] + jnp.sum(p, axis=-1, keepdims=True)
    acc_sc[...] = alpha * acc_sc[...] + jnp.dot(
        p.astype(jnp.bfloat16), g.astype(jnp.bfloat16),
        preferred_element_type=jnp.float32)                        # (TQ, C/2)
    m_sc[...] = m_new

    # --- channel-attention branch: accumulate global average pool over KV tiles
    pooled_sc[...] += jnp.sum(xk, axis=0, keepdims=True)           # (1, C) f32

    @pl.when(ki == nk - 1)
    def _():
        # Deferred softmax normalization (flash-style): divide the (TQ, C/2)
        # accumulator instead of the (TQ, HW) probabilities; EUP reciprocal.
        inv_l = pl.reciprocal(l_sc[...], approx=True)
        agg = (acc_sc[...] * inv_l).astype(jnp.bfloat16)           # (TQ, C/2)
        pos = jnp.dot(agg, wo_ref[...],
                      preferred_element_type=jnp.float32)          # (TQ, C)

        # Channel gate: sigmoid(conv1(relu(BN(conv(avgpool(x)))))) — BN folded
        # into w1/b1 in the wrapper. Tiny, kept in f32 (v5e has no bf16 VPU/EUP).
        pooled = pooled_sc[...] * inv_hw                           # (1, C)
        z = jnp.dot(pooled, w1_ref[...],
                    preferred_element_type=jnp.float32) + b1_ref[...]   # (1, C/8)
        z = jnp.maximum(z, 0.0)
        z2 = jnp.dot(z, w2_ref[...],
                     preferred_element_type=jnp.float32)           # (1, C)
        gate = 1.0 / (1.0 + jnp.exp(-z2))

        out = pos + xq * gate                                      # (TQ, C)
        o_ref[0] = out.astype(o_ref.dtype)


def da1net_forward(x_nchw, w_theta, w_phi, w_g, w_out,
                   w_ca1, bn_gamma, bn_beta, bn_mean, bn_var, bn_eps, w_ca2,
                   *, tq=256, tk=256):
    """DA1Net forward. x_nchw: (B, C, H, W). Conv weights are (Cout, Cin)."""
    b, c, h, w = x_nchw.shape
    hw = h * w
    c8, c2 = c // 8, c // 2

    tq = min(tq, hw)
    tk = min(tk, hw)
    assert hw % tq == 0 and hw % tk == 0, "H*W must be divisible by tq/tk"

    # NCHW -> (B, HW, C) channels-last (layout plumbing, outside the kernel).
    x_flat = jnp.transpose(x_nchw.reshape(b, c, hw), (0, 2, 1))

    # Pre-transposed / fused weights -> no in-kernel transposes, one MXU pass
    # over x_k for both phi and g. bf16 MXU operands (halves weight DMA too).
    wt_t = jnp.transpose(w_theta).astype(jnp.bfloat16)                   # (C, C/8)
    w_pg = jnp.concatenate([jnp.transpose(w_phi), jnp.transpose(w_g)],
                           axis=1).astype(jnp.bfloat16)                  # (C, C/8+C/2)
    wo_t = jnp.transpose(w_out).astype(jnp.bfloat16)                     # (C/2, C)

    # Channel branch: fold inference-mode BatchNorm into the first 1x1 conv.
    # TODO(synk): BatchNorm2d is modeled in eval mode (running stats); training-mode batch statistics are not implemented.
    scale = bn_gamma / jnp.sqrt(bn_var + bn_eps)                         # (C/8,)
    w1_folded = jnp.transpose(w_ca1 * scale[:, None]).astype(jnp.float32)  # (C, C/8)
    b1 = (bn_beta - bn_mean * scale).reshape(1, c8).astype(jnp.float32)    # (1, C/8)
    w2_t = jnp.transpose(w_ca2).astype(jnp.float32)                        # (C/8, C)

    kernel = functools.partial(da1_kernel, c8=c8, inv_hw=1.0 / hw)
    grid = (b, hw // tq, hw // tk)

    out_flat = pl.pallas_call(
        kernel,
        out_shape=jax.ShapeDtypeStruct((b, hw, c), x_nchw.dtype),
        grid_spec=pltpu.PrefetchScalarGridSpec(
            num_scalar_prefetch=0,
            grid=grid,
            in_specs=[
                pl.BlockSpec((1, tq, c), lambda bi, qi, ki: (bi, qi, 0)),   # x query tile
                pl.BlockSpec((1, tk, c), lambda bi, qi, ki: (bi, ki, 0)),   # x key/value tile
                pl.BlockSpec((c, c8), lambda bi, qi, ki: (0, 0)),           # W_theta^T
                pl.BlockSpec((c, c8 + c2), lambda bi, qi, ki: (0, 0)),      # [W_phi^T | W_g^T]
                pl.BlockSpec((c2, c), lambda bi, qi, ki: (0, 0)),           # W_out^T
                pl.BlockSpec((c, c8), lambda bi, qi, ki: (0, 0)),           # channel conv1 (BN folded)
                pl.BlockSpec((1, c8), lambda bi, qi, ki: (0, 0)),           # BN shift
                pl.BlockSpec((c8, c), lambda bi, qi, ki: (0, 0)),           # channel conv2
            ],
            out_specs=pl.BlockSpec((1, tq, c), lambda bi, qi, ki: (bi, qi, 0)),
            scratch_shapes=[
                pltpu.VMEM((tq, 1), jnp.float32),    # running max  m
                pltpu.VMEM((tq, 1), jnp.float32),    # running sum  l
                pltpu.VMEM((tq, c2), jnp.float32),   # unnormalized attn @ g
                pltpu.VMEM((1, c), jnp.float32),     # global average pool accumulator
            ]),
        compiler_params=pltpu.CompilerParams(
            dimension_semantics=("parallel", "parallel", "arbitrary")),
    )(x_flat, x_flat, wt_t, w_pg, wo_t, w1_folded, b1, w2_t)

    # (B, HW, C) -> NCHW
    return jnp.transpose(out_flat, (0, 2, 1)).reshape(b, c, h, w)


def reference(x, w_theta, w_phi, w_g, w_out,
              w_ca1, bn_gamma, bn_beta, bn_mean, bn_var, bn_eps, w_ca2):
    """Pure-JAX reference mirroring the PyTorch DA1Net forward (eval-mode BN)."""
    b, c, h, w = x.shape
    hw = h * w

    def conv1x1(t, wm):
        return jnp.einsum('oc,bchw->bohw', wm, t)

    # Position attention branch.
    theta = conv1x1(x, w_theta).reshape(b, c // 8, hw).transpose(0, 2, 1)
    phi = conv1x1(x, w_phi).reshape(b, c // 8, hw)
    g = conv1x1(x, w_g).reshape(b, c // 2, hw).transpose(0, 2, 1)
    attn = jax.nn.softmax(jnp.einsum('bik,bkj->bij', theta, phi), axis=-1)
    out = jnp.einsum('bij,bjc->bic', attn, g)
    out = out.transpose(0, 2, 1).reshape(b, c // 2, h, w)
    pos = conv1x1(out, w_out)

    # Channel attention branch (DANet / SE-style).
    y = jnp.mean(x, axis=(2, 3), keepdims=True)                    # (B,C,1,1)
    y = conv1x1(y, w_ca1)                                          # (B,C/8,1,1)
    rs = lambda v: v.reshape(1, -1, 1, 1)
    y = (y - rs(bn_mean)) / jnp.sqrt(rs(bn_var) + bn_eps) * rs(bn_gamma) + rs(bn_beta)
    y = jnp.maximum(y, 0.0)
    y = conv1x1(y, w_ca2)                                          # (B,C,1,1)
    gate = jax.nn.sigmoid(y)
    return pos + x * gate


if __name__ == "__main__":
    B, C, H, W = 2, 16, 16, 16          # C//8 = 2, C//2 = 8, HW = 256
    key = jax.random.PRNGKey(0)
    (kx, kt, kp, kg, ko, kc1, kc2, kgm, kb, kmn, kvr) = jax.random.split(key, 11)

    x = jax.random.normal(kx, (B, C, H, W), dtype=jnp.float32)
    # Position-attention 1x1-conv weights (Cout, Cin), bias-free.
    w_theta = 0.1 * jax.random.normal(kt, (C // 8, C), dtype=jnp.float32)
    w_phi = 0.1 * jax.random.normal(kp, (C // 8, C), dtype=jnp.float32)
    w_g = 0.1 * jax.random.normal(kg, (C // 2, C), dtype=jnp.float32)
    w_out = 0.1 * jax.random.normal(ko, (C, C // 2), dtype=jnp.float32)
    # Channel-attention (DANet) weights + eval-mode BatchNorm parameters.
    w_ca1 = 0.1 * jax.random.normal(kc1, (C // 8, C), dtype=jnp.float32)
    w_ca2 = 0.1 * jax.random.normal(kc2, (C, C // 8), dtype=jnp.float32)
    bn_gamma = 1.0 + 0.1 * jax.random.normal(kgm, (C // 8,), dtype=jnp.float32)
    bn_beta = 0.1 * jax.random.normal(kb, (C // 8,), dtype=jnp.float32)
    bn_mean = 0.1 * jax.random.normal(kmn, (C // 8,), dtype=jnp.float32)
    bn_var = 0.5 + jax.random.uniform(kvr, (C // 8,), dtype=jnp.float32)
    bn_eps = 1e-5

    out = da1net_forward(x, w_theta, w_phi, w_g, w_out,
                         w_ca1, bn_gamma, bn_beta, bn_mean, bn_var, bn_eps, w_ca2,
                         tq=128, tk=128)   # 2 query tiles x 2 kv tiles -> exercises online softmax
    out = jax.block_until_ready(out)

    ref = reference(x, w_theta, w_phi, w_g, w_out,
                    w_ca1, bn_gamma, bn_beta, bn_mean, bn_var, bn_eps, w_ca2)
    assert out.shape == (B, C, H, W), out.shape
    # bf16 MXU operands + approx reciprocal -> tolerance loosened vs f32 reference.
    err = float(jnp.max(jnp.abs(out - ref)))
    assert jnp.allclose(out, ref, atol=2e-2, rtol=2e-2), err

    print("KERNEL_OK")
</pallas_src>

<mosaic_0001>
module attributes {stable_mosaic.version = 11 : i64} {
  func.func @da1_kernel(%arg0: i32, %arg1: i32, %arg2: i32, %arg3: memref<1x128x16xf32, #tpu.memory_space<vmem>>, %arg4: memref<1x128x16xf32, #tpu.memory_space<vmem>>, %arg5: memref<16x2xbf16, #tpu.memory_space<vmem>>, %arg6: memref<16x10xbf16, #tpu.memory_space<vmem>>, %arg7: memref<8x16xbf16, #tpu.memory_space<vmem>>, %arg8: memref<16x2xf32, #tpu.memory_space<vmem>>, %arg9: memref<1x2xf32, #tpu.memory_space<vmem>>, %arg10: memref<2x16xf32, #tpu.memory_space<vmem>>, %arg11: memref<1x128x16xf32, #tpu.memory_space<vmem>>, %arg12: memref<128x1xf32, #tpu.memory_space<vmem>>, %arg13: memref<128x1xf32, #tpu.memory_space<vmem>>, %arg14: memref<128x8xf32, #tpu.memory_space<vmem>>, %arg15: memref<1x16xf32, #tpu.memory_space<vmem>>) attributes {dimension_semantics = [#tpu.dimension_semantics<parallel>, #tpu.dimension_semantics<parallel>, #tpu.dimension_semantics<arbitrary>], iteration_bounds = array<i64: 2, 2, 2>, scalar_prefetch = 0 : i64, scratch_operands = 4 : i64, tpu.core_type = #tpu.core_type<tc>, window_params = [{transform_indices = @transform_0, window_bounds = array<i64: 1, 128, 16>}, {transform_indices = @transform_1, window_bounds = array<i64: 1, 128, 16>}, {pipeline_mode = #tpu.pipeline_mode<synchronous>, transform_indices = @transform_2, window_bounds = array<i64: 16, 2>}, {pipeline_mode = #tpu.pipeline_mode<synchronous>, transform_indices = @transform_3, window_bounds = array<i64: 16, 10>}, {pipeline_mode = #tpu.pipeline_mode<synchronous>, transform_indices = @transform_4, window_bounds = array<i64: 8, 16>}, {pipeline_mode = #tpu.pipeline_mode<synchronous>, transform_indices = @transform_5, window_bounds = array<i64: 16, 2>}, {pipeline_mode = #tpu.pipeline_mode<synchronous>, transform_indices = @transform_6, window_bounds = array<i64: 1, 2>}, {pipeline_mode = #tpu.pipeline_mode<synchronous>, transform_indices = @transform_7, window_bounds = array<i64: 2, 16>}, {transform_indices = @transform_8, window_bounds = array<i64: 1, 128, 16>}]} {
    %c0_i32 = arith.constant 0 : i32
    %0 = arith.cmpi eq, %arg2, %c0_i32 : i32
    %1 = arith.extui %0 : i1 to i32
    %c0_i32_0 = arith.constant 0 : i32
    %2 = arith.cmpi ne, %1, %c0_i32_0 : i32
    scf.if %2 {
      %cst_33 = arith.constant 0xFF800000 : f32
      %50 = vector.broadcast %cst_33 : f32 to vector<128x1xf32>
      %c0_34 = arith.constant 0 : index
      %c0_35 = arith.constant 0 : index
      %51 = vector.load %arg12[%c0_34, %c0_35] : memref<128x1xf32, #tpu.memory_space<vmem>>, vector<128x1xf32>
      tpu.vector_store %arg12[%c0_34, %c0_35], %50 {strides = array<i32>} : memref<128x1xf32, #tpu.memory_space<vmem>>, vector<128x1xf32>,
      %cst_36 = arith.constant 0.000000e+00 : f32
      %52 = vector.broadcast %cst_36 : f32 to vector<128x1xf32>
      %c0_37 = arith.constant 0 : index
      %c0_38 = arith.constant 0 : index
      %53 = vector.load %arg13[%c0_37, %c0_38] : memref<128x1xf32, #tpu.memory_space<vmem>>, vector<128x1xf32>
      tpu.vector_store %arg13[%c0_37, %c0_38], %52 {strides = array<i32>} : memref<128x1xf32, #tpu.memory_space<vmem>>, vector<128x1xf32>,
      %cst_39 = arith.constant 0.000000e+00 : f32
      %54 = vector.broadcast %cst_39 : f32 to vector<128x8xf32>
      %c0_40 = arith.constant 0 : index
      %c0_41 = arith.constant 0 : index
      %55 = vector.load %arg14[%c0_40, %c0_41] : memref<128x8xf32, #tpu.memory_space<vmem>>, vector<128x8xf32>
      tpu.vector_store %arg14[%c0_40, %c0_41], %54 {strides = array<i32>} : memref<128x8xf32, #tpu.memory_space<vmem>>, vector<128x8xf32>,
      %cst_42 = arith.constant 0.000000e+00 : f32
      %56 = vector.broadcast %cst_42 : f32 to vector<1x16xf32>
      %c0_43 = arith.constant 0 : index
      %c0_44 = arith.constant 0 : index
      %57 = vector.load %arg15[%c0_43, %c0_44] : memref<1x16xf32, #tpu.memory_space<vmem>>, vector<1x16xf32>
      tpu.vector_store %arg15[%c0_43, %c0_44], %56 {strides = array<i32>} : memref<1x16xf32, #tpu.memory_space<vmem>>, vector<1x16xf32>,
    } else {
    }
    %c0 = arith.constant 0 : index
    %c0_1 = arith.constant 0 : index
    %c0_2 = arith.constant 0 : index
    %3 = vector.load %arg3[%c0, %c0_1, %c0_2] : memref<1x128x16xf32, #tpu.memory_space<vmem>>, vector<1x128x16xf32>
    %4 = vector.shape_cast %3 : vector<1x128x16xf32> to vector<128x16xf32>
    %c0_3 = arith.constant 0 : index
    %c0_4 = arith.constant 0 : index
    %c0_5 = arith.constant 0 : index
    %5 = vector.load %arg4[%c0_3, %c0_4, %c0_5] : memref<1x128x16xf32, #tpu.memory_space<vmem>>, vector<1x128x16xf32>
    %6 = vector.shape_cast %5 : vector<1x128x16xf32> to vector<128x16xf32>
    %7 = arith.truncf %4 : vector<128x16xf32> to vector<128x16xbf16>
    %8 = arith.truncf %6 : vector<128x16xf32> to vector<128x16xbf16>
    %c0_6 = arith.constant 0 : index
    %c0_7 = arith.constant 0 : index
    %9 = vector.load %arg5[%c0_6, %c0_7] : memref<16x2xbf16, #tpu.memory_space<vmem>>, vector<16x2xbf16>
    %cst = arith.constant dense<0.000000e+00> : vector<128x2xf32>
    %10 = tpu.matmul %7, %9, %cst {dimension_numbers = #tpu.dot_dimension_numbers<[1], [0], [0], [1], [0, 0, 1, 1], [], []>} : vector<128x16xbf16>, vector<16x2xbf16>, vector<128x2xf32> -> vector<128x2xf32>
    %c0_8 = arith.constant 0 : index
    %c0_9 = arith.constant 0 : index
    %11 = vector.load %arg6[%c0_8, %c0_9] : memref<16x10xbf16, #tpu.memory_space<vmem>>, vector<16x10xbf16>
    %cst_10 = arith.constant dense<0.000000e+00> : vector<128x10xf32>
    %12 = tpu.matmul %8, %11, %cst_10 {dimension_numbers = #tpu.dot_dimension_numbers<[1], [0], [0], [1], [0, 0, 1, 1], [], []>} : vector<128x16xbf16>, vector<16x10xbf16>, vector<128x10xf32> -> vector<128x10xf32>
    %13 = vector.extract_strided_slice %12 {offsets = [0, 0], sizes = [128, 2], strides = [1, 1]} : vector<128x10xf32> to vector<128x2xf32>
    %14 = vector.extract_strided_slice %12 {offsets = [0, 2], sizes = [128, 8], strides = [1, 1]} : vector<128x10xf32> to vector<128x8xf32>
    %15 = arith.truncf %10 : vector<128x2xf32> to vector<128x2xbf16>
    %16 = arith.truncf %13 : vector<128x2xf32> to vector<128x2xbf16>
    %cst_11 = arith.constant dense<0.000000e+00> : vector<128x128xf32>
    %17 = tpu.matmul %15, %16, %cst_11 {dimension_numbers = #tpu.dot_dimension_numbers<[1], [1], [0], [0], [0, 0, 1, 0], [], []>} : vector<128x2xbf16>, vector<128x2xbf16>, vector<128x128xf32> -> vector<128x128xf32>
    %c0_12 = arith.constant 0 : index
    %c0_13 = arith.constant 0 : index
    %18 = vector.load %arg12[%c0_12, %c0_13] : memref<128x1xf32, #tpu.memory_space<vmem>>, vector<128x1xf32>
    %cst_14 = arith.constant dense<0xFF800000> : vector<128xf32>
    %19 = vector.multi_reduction <maximumf>, %17, %cst_14 [1] : vector<128x128xf32> to vector<128xf32>
    %20 = vector.shape_cast %19 : vector<128xf32> to vector<128x1xf32>
    %21 = arith.maximumf %18, %20 : vector<128x1xf32>
    %22 = arith.subf %18, %21 : vector<128x1xf32>
    %23 = math.exp %22 : vector<128x1xf32>
    %24 = vector.broadcast %21 : vector<128x1xf32> to vector<128x128xf32>
    %25 = arith.subf %17, %24 : vector<128x128xf32>
    %26 = math.exp %25 : vector<128x128xf32>
    %c0_15 = arith.constant 0 : index
    %c0_16 = arith.constant 0 : index
    %27 = vector.load %arg13[%c0_15, %c0_16] : memref<128x1xf32, #tpu.memory_space<vmem>>, vector<128x1xf32>
    %28 = arith.mulf %23, %27 : vector<128x1xf32>
    %cst_17 = arith.constant dense<0.000000e+00> : vector<128xf32>
    %29 = vector.multi_reduction <add>, %26, %cst_17 [1] : vector<128x128xf32> to vector<128xf32>
    %30 = vector.shape_cast %29 : vector<128xf32> to vector<128x1xf32>
    %31 = arith.addf %28, %30 : vector<128x1xf32>
    %c0_18 = arith.constant 0 : index
    %c0_19 = arith.constant 0 : index
    %32 = vector.load %arg13[%c0_18, %c0_19] : memref<128x1xf32, #tpu.memory_space<vmem>>, vector<128x1xf32>
    tpu.vector_store %arg13[%c0_18, %c0_19], %31 {strides = array<i32>} : memref<128x1xf32, #tpu.memory_space<vmem>>, vector<128x1xf32>,
    %c0_20 = arith.constant 0 : index
    %c0_21 = arith.constant 0 : index
    %33 = vector.load %arg14[%c0_20, %c0_21] : memref<128x8xf32, #tpu.memory_space<vmem>>, vector<128x8xf32>
    %34 = vector.broadcast %23 : vector<128x1xf32> to vector<128x8xf32>
    %35 = arith.mulf %34, %33 : vector<128x8xf32>
    %36 = arith.truncf %26 : vector<128x128xf32> to vector<128x128xbf16>
    %37 = arith.truncf %14 : vector<128x8xf32> to vector<128x8xbf16>
    %cst_22 = arith.constant dense<0.000000e+00> : vector<128x8xf32>
    %38 = tpu.matmul %36, %37, %cst_22 {dimension_numbers = #tpu.dot_dimension_numbers<[1], [0], [0], [1], [0, 0, 1, 1], [], []>} : vector<128x128xbf16>, vector<128x8xbf16>, vector<128x8xf32> -> vector<128x8xf32>
    %39 = arith.addf %35, %38 : vector<128x8xf32>
    %c0_23 = arith.constant 0 : index
    %c0_24 = arith.constant 0 : index
    %40 = vector.load %arg14[%c0_23, %c0_24] : memref<128x8xf32, #tpu.memory_space<vmem>>, vector<128x8xf32>
    tpu.vector_store %arg14[%c0_23, %c0_24], %39 {strides = array<i32>} : memref<128x8xf32, #tpu.memory_space<vmem>>, vector<128x8xf32>,
    %c0_25 = arith.constant 0 : index
    %c0_26 = arith.constant 0 : index
    %41 = vector.load %arg12[%c0_25, %c0_26] : memref<128x1xf32, #tpu.memory_space<vmem>>, vector<128x1xf32>
    tpu.vector_store %arg12[%c0_25, %c0_26], %21 {strides = array<i32>} : memref<128x1xf32, #tpu.memory_space<vmem>>, vector<128x1xf32>,
    %c0_27 = arith.constant 0 : index
    %c0_28 = arith.constant 0 : index
    %42 = vector.load %arg15[%c0_27, %c0_28] : memref<1x16xf32, #tpu.memory_space<vmem>>, vector<1x16xf32>
    %cst_29 = arith.constant dense<0.000000e+00> : vector<16xf32>
    %43 = vector.multi_reduction <add>, %6, %cst_29 [0] : vector<128x16xf32> to vector<16xf32>
    %44 = vector.shape_cast %43 : vector<16xf32> to vector<1x16xf32>
    %45 = arith.addf %42, %44 : vector<1x16xf32>
    %c0_30 = arith.constant 0 : index
    %c0_31 = arith.constant 0 : index
    %46 = vector.load %arg15[%c0_30, %c0_31] : memref<1x16xf32, #tpu.memory_space<vmem>>, vector<1x16xf32>
    tpu.vector_store %arg15[%c0_30, %c0_31], %45 {strides = array<i32>} : memref<1x16xf32, #tpu.memory_space<vmem>>, vector<1x16xf32>,
    %c1_i32 = arith.constant 1 : i32
    %47 = arith.cmpi eq, %arg2, %c1_i32 : i32
    %48 = arith.extui %47 : i1 to i32
    %c0_i32_32 = arith.constant 0 : i32
    %49 = arith.cmpi ne, %48, %c0_i32_32 : i32
    scf.if %49 {
      %c0_33 = arith.constant 0 : index
      %c0_34 = arith.constant 0 : index
      %50 = vector.load %arg13[%c0_33, %c0_34] : memref<128x1xf32, #tpu.memory_space<vmem>>, vector<128x1xf32>
      %51 = tpu.reciprocal %50 {approx = true} : vector<128x1xf32> -> vector<128x1xf32>
      %c0_35 = arith.constant 0 : index
      %c0_36 = arith.constant 0 : index
      %52 = vector.load %arg14[%c0_35, %c0_36] : memref<128x8xf32, #tpu.memory_space<vmem>>, vector<128x8xf32>
      %53 = vector.broadcast %51 : vector<128x1xf32> to vector<128x8xf32>
      %54 = arith.mulf %52, %53 : vector<128x8xf32>
      %55 = arith.truncf %54 : vector<128x8xf32> to vector<128x8xbf16>
      %c0_37 = arith.constant 0 : index
      %c0_38 = arith.constant 0 : index
      %56 = vector.load %arg7[%c0_37, %c0_38] : memref<8x16xbf16, #tpu.memory_space<vmem>>, vector<8x16xbf16>
      %cst_39 = arith.constant dense<0.000000e+00> : vector<128x16xf32>
      %57 = tpu.matmul %55, %56, %cst_39 {dimension_numbers = #tpu.dot_dimension_numbers<[1], [0], [0], [1], [0, 0, 1, 1], [], []>} : vector<128x8xbf16>, vector<8x16xbf16>, vector<128x16xf32> -> vector<128x16xf32>
      %c0_40 = arith.constant 0 : index
      %c0_41 = arith.constant 0 : index
      %58 = vector.load %arg15[%c0_40, %c0_41] : memref<1x16xf32, #tpu.memory_space<vmem>>, vector<1x16xf32>
      %cst_42 = arith.constant 3.906250e-03 : f32
      %59 = vector.broadcast %cst_42 : f32 to vector<1x16xf32>
      %60 = arith.mulf %58, %59 : vector<1x16xf32>
      %c0_43 = arith.constant 0 : index
      %c0_44 = arith.constant 0 : index
      %61 = vector.load %arg8[%c0_43, %c0_44] : memref<16x2xf32, #tpu.memory_space<vmem>>, vector<16x2xf32>
      %cst_45 = arith.constant dense<0.000000e+00> : vector<1x2xf32>
      %62 = tpu.matmul %60, %61, %cst_45 {dimension_numbers = #tpu.dot_dimension_numbers<[1], [0], [0], [1], [0, 0, 1, 1], [], []>} : vector<1x16xf32>, vector<16x2xf32>, vector<1x2xf32> -> vector<1x2xf32>
      %c0_46 = arith.constant 0 : index
      %c0_47 = arith.constant 0 : index
      %63 = vector.load %arg9[%c0_46, %c0_47] : memref<1x2xf32, #tpu.memory_space<vmem>>, vector<1x2xf32>
      %64 = arith.addf %62, %63 : vector<1x2xf32>
      %cst_48 = arith.constant 0.000000e+00 : f32
      %65 = vector.broadcast %cst_48 : f32 to vector<1x2xf32>
      %66 = arith.maximumf %64, %65 : vector<1x2xf32>
      %c0_49 = arith.constant 0 : index
      %c0_50 = arith.constant 0 : index
      %67 = vector.load %arg10[%c0_49, %c0_50] : memref<2x16xf32, #tpu.memory_space<vmem>>, vector<2x16xf32>
      %cst_51 = arith.constant dense<0.000000e+00> : vector<1x16xf32>
      %68 = tpu.matmul %66, %67, %cst_51 {dimension_numbers = #tpu.dot_dimension_numbers<[1], [0], [0], [1], [0, 0, 1, 1], [], []>} : vector<1x2xf32>, vector<2x16xf32>, vector<1x16xf32> -> vector<1x16xf32>
      %cst_52 = arith.constant 0.000000e+00 : f32
      %69 = vector.broadcast %cst_52 : f32 to vector<1x16xf32>
      %70 = arith.subf %69, %68 : vector<1x16xf32>
      %71 = math.exp %70 : vector<1x16xf32>
      %cst_53 = arith.constant 1.000000e+00 : f32
      %72 = vector.broadcast %cst_53 : f32 to vector<1x16xf32>
      %73 = arith.addf %72, %71 : vector<1x16xf32>
      %cst_54 = arith.constant 1.000000e+00 : f32
      %74 = vector.broadcast %cst_54 : f32 to vector<1x16xf32>
      %75 = arith.divf %74, %73 : vector<1x16xf32>
      %76 = vector.broadcast %75 : vector<1x16xf32> to vector<128x16xf32>
      %77 = arith.mulf %4, %76 : vector<128x16xf32>
      %78 = arith.addf %57, %77 : vector<128x16xf32>
      %c0_55 = arith.constant 0 : index
      %c0_56 = arith.constant 0 : index
      %c0_57 = arith.constant 0 : index
      %79 = vector.load %arg11[%c0_55, %c0_56, %c0_57] : memref<1x128x16xf32, #tpu.memory_space<vmem>>, vector<1x128x16xf32>
      %80 = vector.shape_cast %79 : vector<1x128x16xf32> to vector<128x16xf32>
      %81 = vector.shape_cast %78 : vector<128x16xf32> to vector<1x128x16xf32>
      tpu.vector_store %arg11[%c0_55, %c0_56, %c0_57], %81 {strides = array<i32>} : memref<1x128x16xf32, #tpu.memory_space<vmem>>, vector<1x128x16xf32>,
    } else {
    }
    return
  }
  func.func @transform_0(%arg0: i32, %arg1: i32, %arg2: i32) -> (i32, i32, i32) {
    %c0_i32 = arith.constant 0 : i32
    %c0_i32_0 = arith.constant 0 : i32
    return %arg0, %arg1, %c0_i32 : i32, i32, i32
  }
  func.func @transform_1(%arg0: i32, %arg1: i32, %arg2: i32) -> (i32, i32, i32) {
    %c0_i32 = arith.constant 0 : i32
    %c0_i32_0 = arith.constant 0 : i32
    return %arg0, %arg2, %c0_i32 : i32, i32, i32
  }
  func.func @transform_2(%arg0: i32, %arg1: i32, %arg2: i32) -> (i32, i32) {
    %c0_i32 = arith.constant 0 : i32
    %c0_i32_0 = arith.constant 0 : i32
    %c0_i32_1 = arith.constant 0 : i32
    return %c0_i32, %c0_i32_0 : i32, i32
  }
  func.func @transform_3(%arg0: i32, %arg1: i32, %arg2: i32) -> (i32, i32) {
    %c0_i32 = arith.constant 0 : i32
    %c0_i32_0 = arith.constant 0 : i32
    %c0_i32_1 = arith.constant 0 : i32
    return %c0_i32, %c0_i32_0 : i32, i32
  }
  func.func @transform_4(%arg0: i32, %arg1: i32, %arg2: i32) -> (i32, i32) {
    %c0_i32 = arith.constant 0 : i32
    %c0_i32_0 = arith.constant 0 : i32
    %c0_i32_1 = arith.constant 0 : i32
    return %c0_i32, %c0_i32_0 : i32, i32
  }
  func.func @transform_5(%arg0: i32, %arg1: i32, %arg2: i32) -> (i32, i32) {
    %c0_i32 = arith.constant 0 : i32
    %c0_i32_0 = arith.constant 0 : i32
    %c0_i32_1 = arith.constant 0 : i32
    return %c0_i32, %c0_i32_0 : i32, i32
  }
  func.func @transform_6(%arg0: i32, %arg1: i32, %arg2: i32) -> (i32, i32) {
    %c0_i32 = arith.constant 0 : i32
    %c0_i32_0 = arith.constant 0 : i32
    %c0_i32_1 = arith.constant 0 : i32
    return %c0_i32, %c0_i32_0 : i32, i32
  }
  func.func @transform_7(%arg0: i32, %arg1: i32, %arg2: i32) -> (i32, i32) {
    %c0_i32 = arith.constant 0 : i32
    %c0_i32_0 = arith.constant 0 : i32
    %c0_i32_1 = arith.constant 0 : i32
    return %c0_i32, %c0_i32_0 : i32, i32
  }
  func.func @transform_8(%arg0: i32, %arg1: i32, %arg2: i32) -> (i32, i32, i32) {
    %c0_i32 = arith.constant 0 : i32
    %c0_i32_0 = arith.constant 0 : i32
    return %arg0, %arg1, %c0_i32 : i32, i32, i32
  }
}

</mosaic_0001>

<bundles_post_ra>
// kernel: tpu_custom_call.1
= control target key start
LH: loop header
LB: loop body
LE: loop exit
PB: predicated region body
PF: predicated region fallthrough
CT: control target
= control target key end

     0   :  { %s2723_s27 = smov 0   ;;  %s2725_s28 = smov 0   ;;  %s3477_s0 = inlined_call_operand.vmem [shape: f32[2,256,16], index: 0, kind: input, shape index: {}]   ;;  %s3478_s1 = inlined_call_operand.vmem [shape: f32[2,256,16], index: 1, kind: input, shape index: {}]   ;;  %s3479_s2 = inlined_call_operand.vmem [shape: bf16[16,2], index: 2, kind: input, shape index: {}]   ;;  %s3480_s3 = inlined_call_operand.vmem [shape: bf16[16,10], index: 3, kind: input, shape index: {}]   ;;  %s3481_s4 = inlined_call_operand.vmem [shape: bf16[8,16], index: 4, kind: input, shape index: {}]   ;;  %s3482_s5 = inlined_call_operand.vmem [shape: f32[16,2], index: 5, kind: input, shape index: {}]   ;;  %s3483_s6 = inlined_call_operand.vmem [shape: f32[1,2], index: 6, kind: input, shape index: {}]   ;;  %s3484_s7 = inlined_call_operand.vmem [shape: f32[2,16], index: 7, kind: input, shape index: {}]   ;;  %s3485_s8 = inlined_call_operand.vmem [shape: f32[2,256,16], index: 8, kind: output, shape index: {}]  }
   0x1   :  { %s2727_s29 = smov 0   ;;  %s2729_s30 = smov 0  }
   0x2   :  { %s2731_s9 = smov 0   ;;  %s2733_s10 = smov 0  }
   0x3   :  { %s2735_s11 = smov 0  }
   0x4 LB: > { %s30_s12 = sadd.s32 1, %s2657_s30  ;;  %s33_s13 = sadd.s32 1, %s2661_s9  ;;  %s2669_s11 = sphi %s2735_s11, %s18_s11   ;;  %s2665_s10 = sphi %s2733_s10, %s3505_s10   ;;  %s2661_s9 = sphi %s2731_s9, %s3504_s9   ;;  %s2657_s30 = sphi %s2729_s30, %s3503_s30   ;;  %s2653_s29 = sphi %s2727_s29, %s3502_s29   ;;  %s2649_s28 = sphi %s2725_s28, %s3501_s28   ;;  %s2645_s27 = sphi %s2723_s27, %s3500_s27  }
   0x5   : > { %p31_p0 = scmp.ge.s32.totalorder %s30_s12, 2  ;;  %p2189_p1 = scmp.ge.s32.totalorder %s2669_s11, 1 }
   0x6   : > { %p307_p2 = scmp.lt.s32.totalorder %s2669_s11, 9  ;;  %s37_s14 = sadd.s32 1, %s2665_s10 }
   0x7   : > { %s3507_s12 = smov (%p31_p0, %s30_s12), 0  ;;  %s3509_s13 = smov (!%p31_p0, %s33_s13), %s2661_s9 }
   0x8   : > { %p308_p3 = pnand %p2189_p1, %p307_p2  ;;  %p35_p4 = scmp.ge.s32.totalorder %s3509_s13, 2 }
   0xa   : > { %s3511_s13 = smov (%p35_p4, %s3509_s13), 0  ;;  %s3513_s14 = smov (!%p35_p4, %s37_s14), %s2665_s10 }
   0xb   : > { %3488 = sst [smem:[#allocation6_spill]] %s3511_s13  ;;  %p39_p5 = scmp.ge.s32.totalorder %s3513_s14, 2 }
   0xc   : > { %311 = sbr.rel (%p308_p3) target bundleno = 1560 (0x618), region = 52 }
   0xd   : > { %s3515_s14 = smov (%p39_p5, %s3513_s14), 0 }
   0xe   : > { %3489 = sst [smem:[#allocation7_spill]] %s3515_s14 }
  0x11   : > { %s2190_s15 = sshll.u32 %s2649_s28, 4  ;;  %p359_p6 = scmp.lt.s32.totalorder %s2653_s29, 1 }
  0x12   : > { %p361_p7 = scmp.lt.s32.totalorder %s2190_s15, 31  ;;  %s2193_s16 = sshll.u32 %s2645_s27, 4 }
  0x13   : > { %s3517_s29 = smov (!%p359_p6, %s2653_s29), 1  ;;  %p371_p8 = scmp.lt.s32.totalorder %s2193_s16, 31 }
  0x14   : > { %s3519_s15 = smov (!%p361_p7, %s2190_s15), 31  ;;  %s2191_s17 = sshll.u32 %s3517_s29, 5 }
  0x15   : > { %s364_s18 = sadd.s32 %s2191_s17, %s3519_s15  ;;  %s3521_s16 = smov (!%p371_p8, %s2193_s16), 31 }
  0x16   : > { %s2192_s19 = sshll.u32 %s364_s18, 3  ;;  %s374_s26 = sadd.s32 %s2191_s17, %s3521_s16 }
  0x17   : > { %s2771_s22 = scalar_lea.vmem %s3477_s0, %s2192_s19  ;;  %s2776_s25 = scalar_lea.vmem %s3485_s8, %s2192_s19 }
  0x18   : > { %s2195_s28 = sshll.u32 %s374_s26, 3  ;;  %p2199_p9 = scmp.ne.s32.totalorder %s2645_s27, 0 }
  0x19   : > { %s2781_s29 = scalar_lea.vmem %s3478_s1, %s2195_s28 }
  0x1a   : > { %392 = sbr.rel (%p2199_p9) target bundleno = 57 (0x39), region = 56 }
  0x1f   : > { %vm393_vm0 = vcmask 7168   ;;  %vm426_vm1 = vcmask 64512   ;;  %v2671_v0 = vmov -inf   ;;  %v2672_v1 = vmov 0.0  }
  0x20   : > { %394 = vst.msk [vmem:[#allocation2] sm:$0xff] %vm393_vm0, %v2671_v0  ;;  %395 = vst.msk [vmem:[#allocation2 + $0x8] sm:$0xff] %vm393_vm0, %v2671_v0  ;;  %vm443_vm2 = vcmask 122880  }
  0x21   : > { %396 = vst.msk [vmem:[#allocation2 + $0x10] sm:$0xff] %vm393_vm0, %v2671_v0  ;;  %397 = vst.msk [vmem:[#allocation2 + $0x18] sm:$0xff] %vm393_vm0, %v2671_v0 }
  0x22   : > { %398 = vst.msk [vmem:[#allocation2 + $0x20] sm:$0xff] %vm393_vm0, %v2671_v0  ;;  %399 = vst.msk [vmem:[#allocation2 + $0x28] sm:$0xff] %vm393_vm0, %v2671_v0 }
  0x23   : > { %400 = vst.msk [vmem:[#allocation2 + $0x30] sm:$0xff] %vm393_vm0, %v2671_v0  ;;  %401 = vst.msk [vmem:[#allocation2 + $0x38] sm:$0xff] %vm393_vm0, %v2671_v0 }
  0x24   : > { %402 = vst.msk [vmem:[#allocation2 + $0x40] sm:$0xff] %vm393_vm0, %v2671_v0  ;;  %403 = vst.msk [vmem:[#allocation2 + $0x48] sm:$0xff] %vm393_vm0, %v2671_v0 }
  0x25   : > { %404 = vst.msk [vmem:[#allocation2 + $0x50] sm:$0xff] %vm393_vm0, %v2671_v0  ;;  %405 = vst.msk [vmem:[#allocation2 + $0x58] sm:$0xff] %vm393_vm0, %v2671_v0 }
  0x26   : > { %406 = vst.msk [vmem:[#allocation2 + $0x60] sm:$0xff] %vm393_vm0, %v2671_v0  ;;  %407 = vst.msk [vmem:[#allocation2 + $0x68] sm:$0xff] %vm393_vm0, %v2671_v0 }
  0x27   : > { %408 = vst.msk [vmem:[#allocation2 + $0x70] sm:$0xff] %vm393_vm0, %v2671_v0  ;;  %409 = vst.msk [vmem:[#allocation2 + $0x78] sm:$0xff] %vm393_vm0, %v2671_v0 }
  0x28   : > { %410 = vst.msk [vmem:[#allocation3] sm:$0xff] %vm393_vm0, %v2672_v1  ;;  %411 = vst.msk [vmem:[#allocation3 + $0x8] sm:$0xff] %vm393_vm0, %v2672_v1 }
  0x29   : > { %412 = vst.msk [vmem:[#allocation3 + $0x10] sm:$0xff] %vm393_vm0, %v2672_v1  ;;  %413 = vst.msk [vmem:[#allocation3 + $0x18] sm:$0xff] %vm393_vm0, %v2672_v1 }
  0x2a   : > { %414 = vst.msk [vmem:[#allocation3 + $0x20] sm:$0xff] %vm393_vm0, %v2672_v1  ;;  %415 = vst.msk [vmem:[#allocation3 + $0x28] sm:$0xff] %vm393_vm0, %v2672_v1 }
  0x2b   : > { %416 = vst.msk [vmem:[#allocation3 + $0x30] sm:$0xff] %vm393_vm0, %v2672_v1  ;;  %417 = vst.msk [vmem:[#allocation3 + $0x38] sm:$0xff] %vm393_vm0, %v2672_v1 }
  0x2c   : > { %418 = vst.msk [vmem:[#allocation3 + $0x40] sm:$0xff] %vm393_vm0, %v2672_v1  ;;  %419 = vst.msk [vmem:[#allocation3 + $0x48] sm:$0xff] %vm393_vm0, %v2672_v1 }
  0x2d   : > { %420 = vst.msk [vmem:[#allocation3 + $0x50] sm:$0xff] %vm393_vm0, %v2672_v1  ;;  %421 = vst.msk [vmem:[#allocation3 + $0x58] sm:$0xff] %vm393_vm0, %v2672_v1 }
  0x2e   : > { %422 = vst.msk [vmem:[#allocation3 + $0x60] sm:$0xff] %vm393_vm0, %v2672_v1  ;;  %423 = vst.msk [vmem:[#allocation3 + $0x68] sm:$0xff] %vm393_vm0, %v2672_v1 }
  0x2f   : > { %424 = vst.msk [vmem:[#allocation3 + $0x70] sm:$0xff] %vm393_vm0, %v2672_v1  ;;  %425 = vst.msk [vmem:[#allocation3 + $0x78] sm:$0xff] %vm393_vm0, %v2672_v1 }
  0x30   : > { %427 = vst.msk [vmem:[#allocation4] sm:$0xff] %vm426_vm1, %v2672_v1  ;;  %428 = vst.msk [vmem:[#allocation4 + $0x8] sm:$0xff] %vm426_vm1, %v2672_v1 }
  0x31   : > { %429 = vst.msk [vmem:[#allocation4 + $0x10] sm:$0xff] %vm426_vm1, %v2672_v1  ;;  %430 = vst.msk [vmem:[#allocation4 + $0x18] sm:$0xff] %vm426_vm1, %v2672_v1 }
  0x32   : > { %431 = vst.msk [vmem:[#allocation4 + $0x20] sm:$0xff] %vm426_vm1, %v2672_v1  ;;  %432 = vst.msk [vmem:[#allocation4 + $0x28] sm:$0xff] %vm426_vm1, %v2672_v1 }
  0x33   : > { %433 = vst.msk [vmem:[#allocation4 + $0x30] sm:$0xff] %vm426_vm1, %v2672_v1  ;;  %434 = vst.msk [vmem:[#allocation4 + $0x38] sm:$0xff] %vm426_vm1, %v2672_v1 }
  0x34   : > { %435 = vst.msk [vmem:[#allocation4 + $0x40] sm:$0xff] %vm426_vm1, %v2672_v1  ;;  %436 = vst.msk [vmem:[#allocation4 + $0x48] sm:$0xff] %vm426_vm1, %v2672_v1 }
  0x35   : > { %437 = vst.msk [vmem:[#allocation4 + $0x50] sm:$0xff] %vm426_vm1, %v2672_v1  ;;  %438 = vst.msk [vmem:[#allocation4 + $0x58] sm:$0xff] %vm426_vm1, %v2672_v1 }
  0x36   : > { %439 = vst.msk [vmem:[#allocation4 + $0x60] sm:$0xff] %vm426_vm1, %v2672_v1  ;;  %440 = vst.msk [vmem:[#allocation4 + $0x68] sm:$0xff] %vm426_vm1, %v2672_v1 }
  0x37   : > { %441 = vst.msk [vmem:[#allocation4 + $0x70] sm:$0xff] %vm426_vm1, %v2672_v1  ;;  %442 = vst.msk [vmem:[#allocation4 + $0x78] sm:$0xff] %vm426_vm1, %v2672_v1 }
  0x38   : > { %444 = vst.msk [vmem:[#allocation5] sm:$0x1] %vm443_vm2, %v2672_v1 }
  0x39 PF: > { %v2511_v2 = vld [vmem:[%s3480_s3] sm:$0xff]   ;;  %v462_v4 = vld [vmem:[%s2781_s29 + $0x8] sm:$0xff]  ;;  %v463_v5 = vld [vmem:[%s2781_s29 + $0x10] sm:$0xff]  ;;  %vm501_vm3 = vcmask 130048   ;;  %vm1588_vm4 = vcmask 122880   ;;  %vm768_vm5 = vcmask 15360  }
  0x3a   : > { %v461_v3 = vld [vmem:[%s2781_s29] sm:$0xff]  ;;  %2322 = vmatprep.subr.bf16.mxu1 %v2511_v2  ;;  %v464_v6 = vld [vmem:[%s2781_s29 + $0x18] sm:$0xff]  ;;  %v1551_v9 = vsel %vm501_vm3, %v462_v4, 0.0  ;;  %v1553_v10 = vsel %vm501_vm3, %v463_v5, 0.0  ;;  %v466_v12 = vld [vmem:[%s2781_s29 + $0x28] sm:$0xff]  ;;  %s2674_s17 = smov 126  }
  0x3b   : > { %v485_v7 = vpack.c.bf16 %v462_v4, %v461_v3  ;;  %v1550_v8 = vsel %vm501_vm3, %v461_v3, 0.0  ;;  %v465_v11 = vld [vmem:[%s2781_s29 + $0x20] sm:$0xff]  ;;  %2323 = vmatpush3.bf16.msra.mxu1 %v2511_v2  ;;  %v486_v14 = vpack.c.bf16 %v464_v6, %v463_v5  ;;  %v1555_v16 = vsel %vm501_vm3, %v464_v6, 0.0  ;;  %v467_v19 = vld [vmem:[%s2781_s29 + $0x30] sm:$0xff]  ;;  %v468_v20 = vld [vmem:[%s2781_s29 + $0x38] sm:$0xff]  ;;  %p2226_p10 = scmp.ne.s32.totalorder %s2645_s27, 1 }
  0x3c   : > { %v1552_v13 = vadd.f32 %v1551_v9, %v1550_v8  ;;  %v487_v15 = vpack.c.bf16 %v466_v12, %v465_v11  ;;  %v1557_v18 = vsel %vm501_vm3, %v465_v11, 0.0  ;;  %v469_v21 = vld [vmem:[%s2781_s29 + $0x40] sm:$0xff]  ;;  %v470_v23 = vld [vmem:[%s2781_s29 + $0x48] sm:$0xff]  ;;  %v1559_v24 = vsel %vm501_vm3, %v466_v12, 0.0  ;;  %v2866_v30 = vld [vmem:[%s2771_s22 + $0x10] sm:$0xff] }
  0x3d   : > { %2324 = vmatprep.mubr.msk.bf16.mxu1 %vm501_vm3, %v485_v7  ;;  %v2512_v25 = vld [vmem:[%s3479_s2] sm:$0xff]   ;;  %v2861_v27 = vld [vmem:[%s2771_s22 + $0x8] sm:$0xff]  ;;  %v2869_v31 = vld [vmem:[%s2771_s22 + $0x18] sm:$0xff]  ;;  %v488_v33 = vpack.c.bf16 %v468_v20, %v467_v19  ;;  %v1561_v34 = vsel %vm501_vm3, %v467_v19, 0.0  ;;  %v489_v38 = vpack.c.bf16 %v470_v23, %v469_v21  ;;  %v1563_v40 = vsel %vm501_vm3, %v468_v20, 0.0 }
  0x3e   : > { %v1554_v17 = vadd.f32 %v1553_v10, %v1552_v13  ;;  %2325 = vmatmul.mubr.msk.bf16.vlgmr.msra.gmra.mxu1 %vm501_vm3, %v486_v14  ;;  %v2858_v26 = vld [vmem:[%s2771_s22] sm:$0xff]  ;;  %3490 = vst [vmem:[#allocation8_spill] sm:$0xff] %v2861_v27  ;;  %3491 = vst [vmem:[#allocation9_spill] sm:$0xff] %v2869_v31  ;;  %2304 = vmatprep.subr.bf16.mxu0 %v2512_v25  ;;  %v478_v35 = vpack.c.bf16 %v2869_v31, %v2866_v30  ;;  %v2878_v36 = vld [vmem:[%s2771_s22 + $0x28] sm:$0xff]  ;;  %v1565_v42 = vsel %vm501_vm3, %v469_v21, 0.0  ;;  %vm1234_vm6 = vcmask 7168  }
  0x3f   : > { %2328 = vmatprep.mubr.msk.bf16.mxu1 %vm501_vm3, %v487_v15  ;;  %v477_v29 = vpack.c.bf16 %v2861_v27, %v2858_v26  ;;  %v2872_v32 = vld [vmem:[%s2771_s22 + $0x20] sm:$0xff]  ;;  %2305 = vmatpush3.bf16.msra.mxu0 %v2512_v25  ;;  %v471_v43 = vld [vmem:[%s2781_s29 + $0x50] sm:$0xff]  ;;  %v472_v44 = vld [vmem:[%s2781_s29 + $0x58] sm:$0xff]  ;;  %v1567_v49 = vsel %vm501_vm3, %v470_v23, 0.0  ;;  %vm1516_vm7 = vcmask 64512  }
  0x40   : > { %v1556_v22 = vadd.f32 %v1555_v16, %v1554_v17  ;;  %v479_v39 = vpack.c.bf16 %v2878_v36, %v2872_v32  ;;  %v473_v46 = vld [vmem:[%s2781_s29 + $0x60] sm:$0xff]  ;;  %v2893_v47 = vld [vmem:[%s2771_s22 + $0x30] sm:$0xff]  ;;  %v2896_v48 = vld [vmem:[%s2771_s22 + $0x38] sm:$0xff]  ;;  %v490_v54 = vpack.c.bf16 %v472_v44, %v471_v43  ;;  %v1569_v55 = vsel %vm501_vm3, %v471_v43, 0.0 }
  0x41   : > { %2306 = vmatprep.mubr.msk.bf16.mxu0 %vm501_vm3, %v477_v29  ;;  %v474_v50 = vld [vmem:[%s2781_s29 + $0x68] sm:$0xff]  ;;  %v2901_v51 = vld [vmem:[%s2771_s22 + $0x40] sm:$0xff]  ;;  %v480_v56 = vpack.c.bf16 %v2896_v48, %v2893_v47  ;;  %v1571_v60 = vsel %vm501_vm3, %v472_v44, 0.0  ;;  %v1573_v62 = vsel %vm501_vm3, %v473_v46, 0.0  ;;  %v475_v63 = vld [vmem:[%s2781_s29 + $0x70] sm:$0xff] }
  0x42   : > { %v1558_v28 = vadd.f32 %v1557_v18, %v1556_v22  ;;  %2307 = vmatmul.mubr.msk.bf16.vlgmr.msra.gmra.mxu0 %vm501_vm3, %v478_v35  ;;  %v2904_v52 = vld [vmem:[%s2771_s22 + $0x48] sm:$0xff]  ;;  %v491_v58 = vpack.c.bf16 %v474_v50, %v473_v46  ;;  %v476_v1 = vld [vmem:[%s2781_s29 + $0x78] sm:$0xff]  ;;  %v2920_v2 = vld [vmem:[%s2771_s22 + $0x50] sm:$0xff]  ;;  %v1575_v4 = vsel %vm501_vm3, %v474_v50, 0.0  ;;  %v1577_v9 = vsel %vm501_vm3, %v475_v63, 0.0 }
  0x43   : > { %2310 = vmatprep.mubr.msk.bf16.mxu0 %vm501_vm3, %v479_v39  ;;  %v481_v59 = vpack.c.bf16 %v2904_v52, %v2901_v51  ;;  %v2923_v3 = vld [vmem:[%s2771_s22 + $0x58] sm:$0xff]  ;;  %v2927_v5 = vld [vmem:[%s2771_s22 + $0x60] sm:$0xff]  ;;  %v2930_v6 = vld [vmem:[%s2771_s22 + $0x68] sm:$0xff]  ;;  %v492_v8 = vpack.c.bf16 %v476_v1, %v475_v63  ;;  %v1579_v13 = vsel %vm501_vm3, %v476_v1, 0.0 }
  0x44   : > { %v1560_v37 = vadd.f32 %v1559_v24, %v1558_v28  ;;  %v482_v10 = vpack.c.bf16 %v2923_v3, %v2920_v2  ;;  %v483_v12 = vpack.c.bf16 %v2930_v6, %v2927_v5  ;;  %v2942_v16 = vld [vmem:[%s2771_s22 + $0x70] sm:$0xff]  ;;  %v2945_v17 = vld [vmem:[%s2771_s22 + $0x78] sm:$0xff]  ;;  %v1549_v24 = vld [vmem:[#allocation5] sm:$0x1] }
  0x45   : > { %v484_v19 = vpack.c.bf16 %v2945_v17, %v2942_v16  ;;  %v3163_v27 = vld [vmem:[#allocation2 + $0x70] sm:$0xff] }
  0x46   : > { %v1562_v41 = vadd.f32 %v1561_v34, %v1560_v37  ;;  %2329 = vmatmul.mubr.msk.bf16.gmra.mxu1 %vm501_vm3, %v488_v33 }
  0x47   : > { %2332 = vmatprep.mubr.msk.bf16.mxu1 %vm501_vm3, %v489_v38 }
  0x48   : > { %v1564_v45 = vadd.f32 %v1563_v40, %v1562_v41 }
  0x4a   : > { %v1566_v53 = vadd.f32 %v1565_v42, %v1564_v45  ;;  %2311 = vmatmul.mubr.msk.bf16.gmra.mxu0 %vm501_vm3, %v480_v56 }
  0x4b   : > { %2314 = vmatprep.mubr.msk.bf16.mxu0 %vm501_vm3, %v481_v59 }
  0x4c   : > { %v1568_v57 = vadd.f32 %v1567_v49, %v1566_v53 }
  0x4e   : > { %v1570_v61 = vadd.f32 %v1569_v55, %v1568_v57  ;;  %2333 = vmatmul.mubr.msk.bf16.gmra.mxu1 %vm501_vm3, %v490_v54 }
  0x4f   : > { %2336 = vmatprep.mubr.msk.bf16.mxu1 %vm501_vm3, %v491_v58 }
  0x50   : > { %v1572_v0 = vadd.f32 %v1571_v60, %v1570_v61 }
  0x52   : > { %v1574_v7 = vadd.f32 %v1573_v62, %v1572_v0  ;;  %2315 = vmatmul.mubr.msk.bf16.gmra.mxu0 %vm501_vm3, %v482_v10 }
  0x53   : > { %2318 = vmatprep.mubr.msk.bf16.mxu0 %vm501_vm3, %v483_v12 }
  0x54   : > { %v1576_v11 = vadd.f32 %v1575_v4, %v1574_v7 }
  0x56   : > { %v1578_v14 = vadd.f32 %v1577_v9, %v1576_v11  ;;  %2337 = vmatmul.mubr.msk.bf16.gmra.mxu1 %vm501_vm3, %v492_v8 }
  0x58   : > { %v1580_v15 = vadd.f32 %v1579_v13, %v1578_v14 }
  0x5a   : > { %v1581_v18 = vrot.slane %v1580_v15, 4  ;;  %2319 = vmatmul.mubr.msk.bf16.gmra.mxu0 %vm501_vm3, %v484_v19 }
  0x5c   : > { %v1582_v20 = vadd.f32 %v1581_v18, %v1580_v15 }
  0x5e   : > { %v1583_v21 = vrot.slane %v1582_v20, 2 }
  0x60   : > { %v1584_v22 = vadd.f32 %v1583_v21, %v1582_v20 }
  0x62   : > { %v1585_v23 = vrot.slane %v1584_v22, 1 }
  0x64   : > { %v1586_v25 = vadd.f32 %v1585_v23, %v1584_v22 }
  0x66   : > { %v1587_v28 = vadd.f32 %v1586_v25, %v1549_v24 }
  0x68   : > { %1589 = vst.msk [vmem:[#allocation5] sm:$0x1] %vm1588_vm4, %v1587_v28 }
  0xfe   : > { %v2326_v29 = vpop.f32.mrf.mxu1 }
 0x100   : > { %v689_v33 = vpop.f32.mrf.mxu1 }
 0x102   : > { %v2327_v34 = vpop.f32.mrf.mxu1  ;;  %v2308_v40 = vpop.f32.mrf.mxu0 }
 0x103   : > { %v2950_v35 = vpack.c.bf16 %v2327_v34, %v2326_v29 }
 0x104   : > { %v692_v37 = vpop.f32.mrf.mxu1  ;;  %v560_v42 = vpop.f32.mrf.mxu0 }
 0x105   : > { %v2952_v38 = vpack.c.bf16 %v692_v37, %v689_v33  ;;  %v797_v19 = vsel %vm768_vm5, %v2950_v35, 0 }
 0x106   : > { %v2330_v39 = vpop.f32.mrf.mxu1  ;;  %v2309_v44 = vpop.f32.mrf.mxu0 }
 0x107   : > { %v753_v45 = vpack.c.bf16 %v2309_v44, %v2308_v40  ;;  %v794_v22 = vsel %vm768_vm5, %v2952_v38, 0 }
 0x108   : > { %v705_v41 = vpop.f32.mrf.mxu1  ;;  %v563_v49 = vpop.f32.mrf.mxu0 }
 0x109   : > { %v752_v50 = vpack.c.bf16 %v563_v49, %v560_v42 }
 0x10a   : > { %v2331_v43 = vpop.f32.mrf.mxu1  ;;  %v2312_v12 = vpop.f32.mrf.mxu0 }
 0x10b   : > { %2356 = vmatprep.mubr.msk.bf16.mxu0 %vm768_vm5, %v752_v50  ;;  %v2977_v8 = vpack.c.bf16 %v2331_v43, %v2330_v39 }
 0x10c   : > { %v708_v46 = vpop.f32.mrf.mxu1  ;;  %v576_v13 = vpop.f32.mrf.mxu0 }
 0x10d   : > { %v2983_v10 = vpack.c.bf16 %v708_v46, %v705_v41  ;;  %v803_v11 = vsel %vm768_vm5, %v2977_v8, 0 }
 0x10e   : > { %v2334_v53 = vpop.f32.mrf.mxu1  ;;  %v2313_v15 = vpop.f32.mrf.mxu0 }
 0x10f   : > { %v800_v14 = vsel %vm768_vm5, %v2983_v10, 0  ;;  %v755_v34 = vpack.c.bf16 %v2313_v15, %v2312_v12  ;;  %v3079_v12 = vld [vmem:[#allocation2 + $0x8] sm:$0xff] }
 0x110   : > { %v721_v54 = vpop.f32.mrf.mxu1  ;;  %v579_v18 = vpop.f32.mrf.mxu0 }
 0x111   : > { %v754_v25 = vpack.c.bf16 %v579_v18, %v576_v13  ;;  %v3090_v18 = vld [vmem:[#allocation2 + $0x20] sm:$0xff] }
 0x112   : > { %v2335_v55 = vpop.f32.mrf.mxu1  ;;  %v2316_v20 = vpop.f32.mrf.mxu0 }
 0x113   : > { %v2965_v0 = vpack.c.bf16 %v2335_v55, %v2334_v53 }
 0x114   : > { %v724_v56 = vpop.f32.mrf.mxu1  ;;  %v592_v21 = vpop.f32.mrf.mxu0 }
 0x115   : > { %v2971_v4 = vpack.c.bf16 %v724_v56, %v721_v54  ;;  %v809_v7 = vsel %vm768_vm5, %v2965_v0, 0  ;;  %v2673_v54 = vmov 0  }
 0x116   : > { %v2338_v57 = vpop.f32.mrf.mxu1  ;;  %v2317_v23 = vpop.f32.mrf.mxu0  ;;  %2509 = vset.pattern.permute.xlu0 %v2673_v54  ;;  %2510 = vset.pattern.permute.xlu1 %v2673_v54 }
 0x117   : > { %v806_v9 = vsel %vm768_vm5, %v2971_v4, 0  ;;  %v757_v41 = vpack.c.bf16 %v2317_v23, %v2316_v20 }
 0x118   : > { %v737_v58 = vpop.f32.mrf.mxu1  ;;  %v595_v24 = vpop.f32.mrf.mxu0 }
 0x119   : > { %v756_v33 = vpack.c.bf16 %v595_v24, %v592_v21  ;;  %v3097_v21 = vld [vmem:[#allocation2 + $0x38] sm:$0xff]  ;;  %v3102_v24 = vld [vmem:[#allocation2 + $0x30] sm:$0xff] }
 0x11a   : > { %v2339_v59 = vpop.f32.mrf.mxu1  ;;  %v2320_v28 = vpop.f32.mrf.mxu0 }
 0x11b   : > { %v2955_v60 = vpack.c.bf16 %v2339_v59, %v2338_v57 }
 0x11c   : > { %v740_v61 = vpop.f32.mrf.mxu1  ;;  %v608_v29 = vpop.f32.mrf.mxu0 }
 0x11d   : > { %v2957_v62 = vpack.c.bf16 %v740_v61, %v737_v58  ;;  %2436 = vmatprep.subr.msk.bf16.mxu0 %vm768_vm5, %v2955_v60  ;;  %v815_v63 = vsel %vm768_vm5, %v2955_v60, 0 }
 0x11e   : > { %2341 = vmatpush3.bf16.xpose.msra.mxu0 %v815_v63  ;;  %v2321_v37 = vpop.f32.mrf.mxu0 }
 0x11f   : > { %2437 = vmatprep.subr.msk.bf16.mxu0 %vm768_vm5, %v2957_v62  ;;  %v812_v1 = vsel %vm768_vm5, %v2957_v62, 0  ;;  %v759_v42 = vpack.c.bf16 %v2321_v37, %v2320_v28 }
 0x120   : > { %v611_v39 = vpop.f32.mrf.mxu0 }
 0x121   : > { %v758_v40 = vpack.c.bf16 %v611_v39, %v608_v29  ;;  %v3110_v29 = vld [vmem:[#allocation2 + $0x28] sm:$0xff]  ;;  %v3120_v39 = vld [vmem:[#allocation2 + $0x40] sm:$0xff] }
 0x126   : > { %2343 = vmatpush3.bf16.xpose.msra.mxu0 %v812_v1 }
 0x127   : > { %2438 = vmatprep.subr.msk.bf16.mxu0 %vm768_vm5, %v2965_v0 }
 0x12e   : > { %2345 = vmatpush3.bf16.xpose.msra.mxu0 %v809_v7 }
 0x12f   : > { %2439 = vmatprep.subr.msk.bf16.mxu0 %vm768_vm5, %v2971_v4 }
 0x136   : > { %2347 = vmatpush3.bf16.xpose.msra.mxu0 %v806_v9 }
 0x137   : > { %2440 = vmatprep.subr.msk.bf16.mxu0 %vm768_vm5, %v2977_v8 }
 0x13e   : > { %2349 = vmatpush3.bf16.xpose.msra.mxu0 %v803_v11 }
 0x13f   : > { %2441 = vmatprep.subr.msk.bf16.mxu0 %vm768_vm5, %v2983_v10 }
 0x146   : > { %2351 = vmatpush3.bf16.xpose.msra.mxu0 %v800_v14 }
 0x147   : > { %2442 = vmatprep.subr.msk.bf16.mxu0 %vm768_vm5, %v2950_v35 }
 0x14e   : > { %2353 = vmatpush3.bf16.xpose.msra.mxu0 %v797_v19 }
 0x14f   : > { %2443 = vmatprep.subr.msk.bf16.mxu0 %vm768_vm5, %v2952_v38 }
 0x156   : > { %2355 = vmatpush3.bf16.xpose.msra.mxu0 %v794_v22 }
 0x15d   : > { %2357 = vmatmul.mubr.msk.bf16.vlgmr.msra.gmra.mxu0 %vm768_vm5, %v753_v45 }
 0x15e   : > { %2360 = vmatprep.mubr.msk.bf16.mxu0 %vm768_vm5, %v754_v25 }
 0x165   : > { %2361 = vmatmul.mubr.msk.bf16.gmra.mxu0 %vm768_vm5, %v755_v34 }
 0x166   : > { %2364 = vmatprep.mubr.msk.bf16.mxu0 %vm768_vm5, %v756_v33  ;;  %v926_v33 = vld [vmem:[#allocation2 + $0x60] sm:$0xff] }
 0x16d   : > { %2365 = vmatmul.mubr.msk.bf16.gmra.mxu0 %vm768_vm5, %v757_v41 }
 0x16e   : > { %2368 = vmatprep.mubr.msk.bf16.mxu0 %vm768_vm5, %v758_v40 }
 0x175   : > { %2369 = vmatmul.mubr.msk.bf16.gmra.mxu0 %vm768_vm5, %v759_v42  ;;  %v3128_v42 = vld [vmem:[#allocation2 + $0x58] sm:$0xff] }
 0x21d   : > { %v3006_v43 = vpop.f32.mrf.mxu0 }
 0x21e   : > { %934 = vmax.xlane.f32.xlu1 %v3006_v43 }
 0x21f   : > { %v3009_v44 = vpop.f32.mrf.mxu0 }
 0x220   : > { %930 = vmax.xlane.f32.xlu0 %v3009_v44 }
 0x221   : > { %v3012_v45 = vpop.f32.mrf.mxu0 }
 0x222   : > { %936 = vmax.xlane.f32.xlu1 %v3012_v45 }
 0x223   : > { %v3015_v46 = vpop.f32.mrf.mxu0 }
 0x224   : > { %932 = vmax.xlane.f32.xlu0 %v3015_v46 }
 0x225   : > { %v3018_v49 = vpop.f32.mrf.mxu0 }
 0x227   : > { %v3020_v50 = vpop.f32.mrf.mxu0 }
 0x228   : > { %938 = vmax.xlane.f32.xlu0 %v3020_v50 }
 0x229   : > { %v3023_v53 = vpop.f32.mrf.mxu0 }
 0x22a   : > { %944 = vmax.xlane.f32.xlu1 %v3023_v53 }
 0x22b   : > { %v3026_v55 = vpop.f32.mrf.mxu0 }
 0x22c   : > { %942 = vmax.xlane.f32.xlu0 %v3018_v49 }
 0x22d   : > { %v3029_v56 = vpop.f32.mrf.mxu0 }
 0x22e   : > { %940 = vmax.xlane.f32.xlu1 %v3026_v55 }
 0x22f   : > { %v3032_v57 = vpop.f32.mrf.mxu0 }
 0x230   : > { %946 = vmax.xlane.f32.xlu0 %v3032_v57 }
 0x231   : > { %v3035_v58 = vpop.f32.mrf.mxu0 }
 0x232   : > { %952 = vmax.xlane.f32.xlu1 %v3035_v58 }
 0x233   : > { %v3038_v59 = vpop.f32.mrf.mxu0 }
 0x234   : > { %950 = vmax.xlane.f32.xlu0 %v3029_v56 }
 0x235   : > { %v3041_v61 = vpop.f32.mrf.mxu0 }
 0x236   : > { %948 = vmax.xlane.f32.xlu1 %v3038_v59 }
 0x237   : > { %v3044_v63 = vpop.f32.mrf.mxu0 }
 0x238   : > { %954 = vmax.xlane.f32.xlu0 %v3044_v63 }
 0x239   : > { %v3058_v1 = vpop.f32.mrf.mxu0 }
 0x23b   : > { %v3061_v7 = vpop.f32.mrf.mxu0 }
 0x23c   : > { %958 = vmax.xlane.f32.xlu0 %v3041_v61 }
 0x247   : > { %1391 = vrot.lane.b32.xlu1 %v2957_v62, %s2674_s17  ;;  %v3066_v62 = vld [vmem:[#allocation2 + $0x10] sm:$0xff] }
 0x24b   : > { %1389 = vrot.lane.b32.xlu1 %v2965_v0, %s2674_s17  ;;  %v3068_v0 = vld [vmem:[#allocation2] sm:$0xff] }
 0x252   : > { %1393 = vrot.lane.b32.xlu0 %v2955_v60, %s2674_s17 }
 0x256   : > { %1387 = vrot.lane.b32.xlu0 %v2971_v4, %s2674_s17 }
 0x25a   : > { %1383 = vrot.lane.b32.xlu0 %v2983_v10, %s2674_s17  ;;  %v3073_v10 = vld [vmem:[#allocation2 + $0x18] sm:$0xff] }
 0x26f   : > { %960 = vmax.xlane.f32.xlu1 %v3058_v1 }
 0x273   : > { %956 = vmax.xlane.f32.xlu1 %v3061_v7 }
 0x284   : > { %1385 = vrot.lane.b32.xlu1 %v2977_v8, %s2674_s17 }
 0x2a7   : > { %v935_v60 = vpop.xlane.xlu1 %934 }
 0x2a8   : > { %v3071_v4 = vmax.f32 %v3066_v62, %v935_v60 }
 0x2a9   : > { %v931_v9 = vpop.xlane.xlu0 %930 }
 0x2aa   : > { %1535 = vst.msk [vmem:[#allocation2 + $0x10] sm:$0xff] %vm1234_vm6, %v3071_v4  ;;  %v962_v11 = vmax.f32 %v3068_v0, %v931_v9  ;;  %1038 = vperm.xlu0 %2509, %v3071_v4  }
 0x2ab   : > { %v937_v8 = vpop.xlane.xlu1 %936 }
 0x2ac   : > { %1533 = vst.msk [vmem:[#allocation2] sm:$0xff] %vm1234_vm6, %v962_v11  ;;  %v3083_v13 = vmax.f32 %v3073_v10, %v937_v8  ;;  %1028 = vperm.xlu1 %2510, %v962_v11   ;;  %v924_v8 = vld [vmem:[#allocation2 + $0x50] sm:$0xff] }
 0x2ad   : > { %v933_v14 = vpop.xlane.xlu0 %932 }
 0x2ae   : > { %1536 = vst.msk [vmem:[#allocation2 + $0x18] sm:$0xff] %vm1234_vm6, %v3083_v13  ;;  %v3088_v15 = vmax.f32 %v3079_v12, %v933_v14 }
 0x2b0   : > { %1534 = vst.msk [vmem:[#allocation2 + $0x8] sm:$0xff] %vm1234_vm6, %v3088_v15  ;;  %1043 = vperm.xlu1 %2510, %v3083_v13  }
 0x2b1   : > { %v939_v20 = vpop.xlane.xlu0 %938 }
 0x2b2   : > { %v3100_v22 = vmax.f32 %v3090_v18, %v939_v20 }
 0x2b3   : > { %v945_v23 = vpop.xlane.xlu1 %944 }
 0x2b4   : > { %1537 = vst.msk [vmem:[#allocation2 + $0x20] sm:$0xff] %vm1234_vm6, %v3100_v22  ;;  %v3107_v25 = vmax.f32 %v3097_v21, %v945_v23  ;;  %1033 = vperm.xlu1 %2510, %v3088_v15   ;;  %v3144_v23 = vld [vmem:[#allocation2 + $0x48] sm:$0xff] }
 0x2b5   : > { %v943_v28 = vpop.xlane.xlu0 %942 }
 0x2b6   : > { %1540 = vst.msk [vmem:[#allocation2 + $0x38] sm:$0xff] %vm1234_vm6, %v3107_v25  ;;  %v3117_v34 = vmax.f32 %v3102_v24, %v943_v28  ;;  %1063 = vperm.xlu0 %2509, %v3107_v25   ;;  %v978_v28 = vsub.f32 %v3068_v0, %v962_v11  ;;  %v980_v0 = vsub.f32 %v3066_v62, %v3071_v4 }
 0x2b7   : > { %v941_v37 = vpop.xlane.xlu1 %940  ;;  %v981_v62 = vsub.f32 %v3073_v10, %v3083_v13  ;;  %v982_v10 = vsub.f32 %v3090_v18, %v3100_v22 }
 0x2b8   : > { %1539 = vst.msk [vmem:[#allocation2 + $0x30] sm:$0xff] %vm1234_vm6, %v3117_v34  ;;  %v3125_v40 = vmax.f32 %v3110_v29, %v941_v37  ;;  %1058 = vperm.xlu1 %2510, %v3117_v34   ;;  %v994_v11 = vmul.f32 1.442695, %v978_v28  ;;  %v998_v31 = vmul.f32 1.442695, %v980_v0  ;;  %v984_v13 = vsub.f32 %v3102_v24, %v3117_v34 }
 0x2b9   : > { %v947_v41 = vpop.xlane.xlu0 %946 }
 0x2ba   : > { %1538 = vst.msk [vmem:[#allocation2 + $0x28] sm:$0xff] %vm1234_vm6, %v3125_v40  ;;  %v3135_v60 = vmax.f32 %v3120_v39, %v947_v41  ;;  %1053 = vperm.xlu0 %2509, %v3125_v40   ;;  %2513 = vpow2.f32 %v994_v11  ;;  %v1000_v11 = vmul.f32 1.442695, %v981_v62 }
 0x2bb   : > { %v953_v9 = vpop.xlane.xlu1 %952  ;;  %2515 = vpow2.f32 %v998_v31  ;;  %v1006_v31 = vmul.f32 1.442695, %v984_v13  ;;  %v3214_v13 = vld [vmem:[#allocation2 + $0x78] sm:$0xff] }
 0x2bc   : > { %1541 = vst.msk [vmem:[#allocation2 + $0x40] sm:$0xff] %vm1234_vm6, %v3135_v60  ;;  %v3141_v14 = vmax.f32 %v3128_v42, %v953_v9  ;;  %1048 = vperm.xlu1 %2510, %v3100_v22   ;;  %2517 = vpow2.f32 %v1000_v11  ;;  %v986_v22 = vsub.f32 %v3120_v39, %v3135_v60 }
 0x2bd   : > { %v951_v20 = vpop.xlane.xlu0 %950 }
 0x2be   : > { %1544 = vst.msk [vmem:[#allocation2 + $0x58] sm:$0xff] %vm1234_vm6, %v3141_v14  ;;  %v972_v41 = vmax.f32 %v924_v8, %v951_v20  ;;  %1083 = vperm.xlu0 %2509, %v3141_v14  }
 0x2bf   : > { %v949_v54 = vpop.xlane.xlu1 %948 }
 0x2c0   : > { %1543 = vst.msk [vmem:[#allocation2 + $0x50] sm:$0xff] %vm1234_vm6, %v972_v41  ;;  %v3154_v9 = vmax.f32 %v3144_v23, %v949_v54  ;;  %1078 = vperm.xlu1 %2510, %v972_v41  }
 0x2c1   : > { %v955_v19 = vpop.xlane.xlu0 %954 }
 0x2c2   : > { %v987_v37 = vsub.f32 %v3144_v23, %v3154_v9  ;;  %1542 = vst.msk [vmem:[#allocation2 + $0x48] sm:$0xff] %vm1234_vm6, %v3154_v9  ;;  %v974_v20 = vmax.f32 %v926_v33, %v955_v19  ;;  %1073 = vperm.xlu0 %2509, %v3154_v9  }
 0x2c3   : > { %v1392_v28 = vpop.permute.xlu1 %1391 }
 0x2c4   : > { %1545 = vst.msk [vmem:[#allocation2 + $0x60] sm:$0xff] %vm1234_vm6, %v974_v20  ;;  %1068 = vperm.xlu1 %2510, %v3135_v60  }
 0x2c5   : > { %v959_v54 = vpop.xlane.xlu0 %958 }
 0x2c6   : > { %v3170_v4 = vmax.f32 %v3163_v27, %v959_v54  ;;  %1379 = vrot.lane.b32.xlu0 %v2952_v38, %s2674_s17  ;;  %v1002_v38 = vmul.f32 1.442695, %v982_v10  ;;  %v3492_v10 = vsub.f32 %v3079_v12, %v3088_v15  ;;  %v3494_v15 = vsub.f32 %v3110_v29, %v3125_v40 }
 0x2c7   : > { %v1390_v54 = vpop.permute.xlu1 %1389  ;;  %v3185_v62 = vpop.eup %2513  ;;  %v1012_v29 = vmul.f32 1.442695, %v987_v37 }
 0x2c8   : > { %v992_v19 = vsub.f32 %v3163_v27, %v3170_v4  ;;  %1547 = vst.msk [vmem:[#allocation2 + $0x70] sm:$0xff] %vm1234_vm6, %v3170_v4  ;;  %1381 = vrot.lane.b32.xlu1 %v2950_v35, %s2674_s17  ;;  %2519 = vpow2.f32 %v1002_v38  ;;  %v988_v35 = vsub.f32 %v924_v8, %v972_v41  ;;  %v3190_v34 = vpop.eup %2515  ;;  %v996_v38 = vmul.f32 1.442695, %v3492_v10 }
 0x2c9   : > { %v1394_v0 = vpop.permute.xlu0 %1393  ;;  %2521 = vpow2.f32 %v1006_v31  ;;  %v3193_v8 = vpop.eup %2517  ;;  %v3493_v31 = vsub.f32 %v3097_v21, %v3107_v25  ;;  %v3495_v25 = vsub.f32 %v3128_v42, %v3141_v14 }
 0x2ca   : > { %2372 = vmatprep.subr.bf16.mxu1 %v1394_v0  ;;  %v1014_v24 = vmul.f32 1.442695, %v988_v35 }
 0x2cb   : > { %2373 = vmatpush3.bf16.msra.mxu1 %v1394_v0  ;;  %v1010_v0 = vmul.f32 1.442695, %v986_v22  ;;  %v1008_v35 = vmul.f32 1.442695, %v3493_v31  ;;  %v927_v22 = vld [vmem:[#allocation2 + $0x68] sm:$0xff] }
 0x2cc   : > { %2374 = vmatprep.subr.bf16.mxu1 %v1392_v28  ;;  %1088 = vperm.xlu1 %2510, %v974_v20   ;;  %2523 = vpow2.f32 %v1014_v24 }
 0x2cd   : > { %v1388_v18 = vpop.permute.xlu0 %1387  ;;  %2525 = vpow2.f32 %v1010_v0 }
 0x2cf   : > { %2375 = vmatpush3.bf16.msra.mxu1 %v1392_v28  ;;  %v990_v28 = vsub.f32 %v926_v33, %v974_v20 }
 0x2d0   : > { %2376 = vmatprep.subr.bf16.mxu1 %v1390_v54  ;;  %1098 = vperm.xlu1 %2510, %v3170_v4  }
 0x2d1   : > { %v1018_v41 = vmul.f32 1.442695, %v990_v28  ;;  %v1004_v28 = vmul.f32 1.442695, %v3494_v15  ;;  %v1384_v10 = vpop.permute.xlu0 %1383 }
 0x2d3   : > { %2377 = vmatpush3.bf16.msra.mxu1 %v1390_v54  ;;  %2527 = vpow2.f32 %v1018_v41  ;;  %v1016_v41 = vmul.f32 1.442695, %v3495_v25 }
 0x2d4   : > { %2378 = vmatprep.subr.bf16.mxu1 %v1388_v18  ;;  %1269 = vperm.xlu1 %2510, %v3185_v62   ;;  %2529 = vpow2.f32 %v996_v38 }
 0x2d5   : > { %v3196_v11 = vpop.eup %2519  ;;  %2531 = vpow2.f32 %v1008_v35 }
 0x2d6   : > { %v3199_v39 = vpop.eup %2521  ;;  %2533 = vpow2.f32 %v1004_v28 }
 0x2d7   : > { %2379 = vmatpush3.bf16.msra.mxu1 %v1388_v18  ;;  %2535 = vpow2.f32 %v1016_v41 }
 0x2d8   : > { %1279 = vperm.xlu1 %2510, %v3190_v34   ;;  %2537 = vpow2.f32 %v1012_v29 }
 0x2d9   : > { %v3202_v33 = vpop.eup %2523 }
 0x2da   : > { %v3205_v60 = vpop.eup %2525 }
 0x2dc   : > { %1284 = vperm.xlu1 %2510, %v3193_v8  }
 0x2e0   : > { %1289 = vperm.xlu1 %2510, %v3196_v11   ;;  %v3208_v20 = vpop.eup %2527 }
 0x2e1   : > { %v3237_v38 = vpop.eup %2529 }
 0x2e2   : > { %v3240_v14 = vpop.eup %2531 }
 0x2e4   : > { %1299 = vperm.xlu1 %2510, %v3199_v39  }
 0x2e8   : > { %1319 = vperm.xlu1 %2510, %v3202_v33  }
 0x2ec   : > { %1309 = vperm.xlu1 %2510, %v3205_v60  }
 0x2f0   : > { %1329 = vperm.xlu1 %2510, %v3208_v20  }
 0x2f8   : > { %v961_v54 = vpop.xlane.xlu1 %960 }
 0x2f9   : > { %v3220_v18 = vmax.f32 %v3214_v13, %v961_v54  ;;  %v3243_v54 = vpop.eup %2533 }
 0x2fa   : > { %v3246_v31 = vpop.eup %2535 }
 0x2fb   : > { %v993_v24 = vsub.f32 %v3214_v13, %v3220_v18  ;;  %1548 = vst.msk [vmem:[#allocation2 + $0x78] sm:$0xff] %vm1234_vm6, %v3220_v18  ;;  %v3249_v23 = vpop.eup %2537 }
 0x2fc   : > { %v957_v12 = vpop.xlane.xlu1 %956 }
 0x2fd   : > { %v975_v0 = vmax.f32 %v927_v22, %v957_v12 }
 0x2ff   : > { %1546 = vst.msk [vmem:[#allocation2 + $0x68] sm:$0xff] %vm1234_vm6, %v975_v0  ;;  %1093 = vperm.xlu0 %2509, %v975_v0   ;;  %v991_v40 = vsub.f32 %v927_v22, %v975_v0 }
 0x300   : > { %v1386_v21 = vpop.permute.xlu1 %1385 }
 0x301   : > { %2380 = vmatprep.subr.bf16.mxu1 %v1386_v21  ;;  %v1020_v42 = vmul.f32 1.442695, %v991_v40 }
 0x302   : > { %2381 = vmatpush3.bf16.msra.mxu1 %v1386_v21 }
 0x303   : > { %1103 = vperm.xlu0 %2509, %v3220_v18   ;;  %2382 = vmatprep.subr.bf16.mxu1 %v1384_v10  ;;  %2539 = vpow2.f32 %v1020_v42 }
 0x306   : > { %2383 = vmatpush3.bf16.msra.mxu1 %v1384_v10 }
 0x307   : > { %1274 = vperm.xlu0 %2509, %v3237_v38  }
 0x30b   : > { %1304 = vperm.xlu0 %2509, %v3240_v14  }
 0x30f   : > { %1294 = vperm.xlu0 %2509, %v3243_v54  }
 0x310   : > { %v3252_v37 = vpop.eup %2539 }
 0x313   : > { %1324 = vperm.xlu0 %2509, %v3246_v31  }
 0x317   : > { %1314 = vperm.xlu0 %2509, %v3249_v23  }
 0x31b   : > { %1334 = vperm.xlu0 %2509, %v3252_v37  }
 0x325   : > { %v1039_v9 = vpop.permute.xlu0 %1038 }
 0x326   : > { %v1108_v35 = vsub.f32 %v3006_v43, %v1039_v9 }
 0x327   : > { %v1029_v22 = vpop.permute.xlu1 %1028 }
 0x328   : > { %v1126_v12 = vmul.f32 1.442695, %v1108_v35  ;;  %v1106_v15 = vsub.f32 %v3009_v44, %v1029_v22 }
 0x32a   : > { %v1122_v28 = vmul.f32 1.442695, %v1106_v15  ;;  %2541 = vpow2.f32 %v1126_v12 }
 0x32b   : > { %v1044_v0 = vpop.permute.xlu1 %1043 }
 0x32c   : > { %2543 = vpow2.f32 %v1122_v28  ;;  %v1109_v21 = vsub.f32 %v3012_v45, %v1044_v0 }
 0x32e   : > { %v1128_v25 = vmul.f32 1.442695, %v1109_v21 }
 0x32f   : > { %v1034_v41 = vpop.permute.xlu1 %1033 }
 0x330   : > { %2545 = vpow2.f32 %v1128_v25  ;;  %v1107_v10 = vsub.f32 %v3015_v46, %v1034_v41 }
 0x331   : > { %v1064_v29 = vpop.permute.xlu0 %1063 }
 0x332   : > { %v1124_v40 = vmul.f32 1.442695, %v1107_v10  ;;  %v1113_v42 = vsub.f32 %v3023_v53, %v1064_v29 }
 0x333   : > { %v1059_v43 = vpop.permute.xlu1 %1058 }
 0x334   : > { %2547 = vpow2.f32 %v1124_v40  ;;  %v1136_v9 = vmul.f32 1.442695, %v1113_v42  ;;  %v1112_v44 = vsub.f32 %v3018_v49, %v1059_v43 }
 0x335   : > { %v1054_v35 = vpop.permute.xlu0 %1053 }
 0x336   : > { %v1134_v22 = vmul.f32 1.442695, %v1112_v44  ;;  %v1111_v12 = vsub.f32 %v3026_v55, %v1054_v35  ;;  %2549 = vpow2.f32 %v1136_v9 }
 0x337   : > { %v1049_v45 = vpop.permute.xlu1 %1048  ;;  %v2542_v15 = vpop.eup %2541 }
 0x338   : > { %2551 = vpow2.f32 %v1134_v22  ;;  %v1132_v28 = vmul.f32 1.442695, %v1111_v12  ;;  %v1110_v46 = vsub.f32 %v3020_v50, %v1049_v45 }
 0x339   : > { %v2544_v0 = vpop.eup %2543  ;;  %v1084_v21 = vpop.permute.xlu0 %1083 }
 0x33a   : > { %v1130_v25 = vmul.f32 1.442695, %v1110_v46  ;;  %v1117_v53 = vsub.f32 %v3035_v58, %v1084_v21  ;;  %1190 = vadd.xlane.f32.xlu0 %v2542_v15  ;;  %1186 = vadd.xlane.f32.xlu1 %v2544_v0  ;;  %2553 = vpow2.f32 %v1132_v28 }
 0x33b   : > { %v1079_v49 = vpop.permute.xlu1 %1078 }
 0x33c   : > { %2555 = vpow2.f32 %v1130_v25  ;;  %v1144_v41 = vmul.f32 1.442695, %v1117_v53  ;;  %v1116_v55 = vsub.f32 %v3029_v56, %v1079_v49 }
 0x33d   : > { %v2546_v10 = vpop.eup %2545  ;;  %v1074_v29 = vpop.permute.xlu0 %1073 }
 0x33e   : > { %v1142_v40 = vmul.f32 1.442695, %v1116_v55  ;;  %v1115_v42 = vsub.f32 %v3038_v59, %v1074_v29  ;;  %1192 = vadd.xlane.f32.xlu0 %v2546_v10  ;;  %2557 = vpow2.f32 %v1144_v41 }
 0x33f   : > { %v1069_v50 = vpop.permute.xlu1 %1068 }
 0x340   : > { %2559 = vpow2.f32 %v1142_v40  ;;  %v1140_v43 = vmul.f32 1.442695, %v1115_v42  ;;  %v1114_v58 = vsub.f32 %v3032_v57, %v1069_v50  ;;  %v1364_v57 = vpack.c.bf16 %v2546_v10, %v2542_v15 }
 0x341   : > { %v2548_v9 = vpop.eup %2547  ;;  %v1380_v59 = vpop.permute.xlu0 %1379 }
 0x342   : > { %v1138_v44 = vmul.f32 1.442695, %v1114_v58  ;;  %1188 = vadd.xlane.f32.xlu0 %v2548_v9  ;;  %v1363_v35 = vpack.c.bf16 %v2548_v9, %v2544_v0  ;;  %2561 = vpow2.f32 %v1140_v43  ;;  %v1022_v43 = vmul.f32 1.442695, %v992_v19 }
 0x343   : > { %v1382_v22 = vpop.permute.xlu1 %1381  ;;  %v2550_v12 = vpop.eup %2549 }
 0x344   : > { %2563 = vpow2.f32 %v1138_v44  ;;  %2384 = vmatprep.subr.bf16.mxu1 %v1382_v22  ;;  %2388 = vmatprep.mubr.bf16.mxu1 %v1363_v35 }
 0x345   : > { %v2552_v56 = vpop.eup %2551  ;;  %2385 = vmatpush3.bf16.msra.mxu1 %v1382_v22 }
 0x346   : > { %1200 = vadd.xlane.f32.xlu0 %v2550_v12  ;;  %1198 = vadd.xlane.f32.xlu1 %v2552_v56  ;;  %v1366_v15 = vpack.c.bf16 %v2550_v12, %v2552_v56 }
 0x347   : > { %2386 = vmatprep.subr.bf16.mxu1 %v1380_v59  ;;  %v1089_v45 = vpop.permute.xlu1 %1088  ;;  %v2554_v28 = vpop.eup %2553 }
 0x348   : > { %v1118_v53 = vsub.f32 %v3044_v63, %v1089_v45 }
 0x349   : > { %v2556_v46 = vpop.eup %2555  ;;  %2387 = vmatpush3.bf16.msra.mxu1 %v1380_v59 }
 0x34a   : > { %1196 = vadd.xlane.f32.xlu0 %v2554_v28  ;;  %1194 = vadd.xlane.f32.xlu1 %v2556_v46  ;;  %v1365_v0 = vpack.c.bf16 %v2554_v28, %v2556_v46  ;;  %v1146_v40 = vmul.f32 1.442695, %v1118_v53 }
 0x34b   : > { %v1099_v21 = vpop.permute.xlu1 %1098  ;;  %v2558_v25 = vpop.eup %2557 }
 0x34c   : > { %v1120_v49 = vsub.f32 %v3041_v61, %v1099_v21  ;;  %2389 = vmatmul.mubr.bf16.vlgmr.msra.gmra.mxu1 %v1364_v57 }
 0x34d   : > { %v2560_v41 = vpop.eup %2559  ;;  %2392 = vmatprep.mubr.bf16.mxu1 %v1365_v0 }
 0x34e   : > { %v1150_v55 = vmul.f32 1.442695, %v1120_v49  ;;  %1208 = vadd.xlane.f32.xlu0 %v2558_v25  ;;  %1206 = vadd.xlane.f32.xlu1 %v2560_v41  ;;  %v1368_v63 = vpack.c.bf16 %v2558_v25, %v2560_v41 }
 0x34f   : > { %v2562_v29 = vpop.eup %2561  ;;  %v3277_v19 = vpop.permute.xlu1 %1269 }
 0x350   : > { %2565 = vpow2.f32 %v1150_v55 }
 0x351   : > { %v2564_v42 = vpop.eup %2563  ;;  %2567 = vpow2.f32 %v1146_v40  ;;  %v1154_v40 = vld [vmem:[#allocation3] sm:$0xff] }
 0x352   : > { %1204 = vadd.xlane.f32.xlu0 %v2562_v29  ;;  %1202 = vadd.xlane.f32.xlu1 %v2564_v42  ;;  %v1367_v10 = vpack.c.bf16 %v2562_v29, %v2564_v42  ;;  %2569 = vpow2.f32 %v1022_v43  ;;  %v1156_v29 = vld [vmem:[#allocation3 + $0x10] sm:$0xff] }
 0x353   : > { %v3282_v28 = vpop.permute.xlu1 %1279  ;;  %v1172_v42 = vmul.f32 %v3190_v34, %v1156_v29  ;;  %v1158_v29 = vld [vmem:[#allocation3 + $0x20] sm:$0xff] }
 0x354   : > { %2393 = vmatmul.mubr.bf16.gmra.mxu1 %v1366_v15  ;;  %v1170_v15 = vmul.f32 %v3185_v62, %v1154_v40  ;;  %v1161_v62 = vld [vmem:[#allocation3 + $0x38] sm:$0xff] }
 0x355   : > { %2396 = vmatprep.mubr.bf16.mxu1 %v1367_v10 }
 0x35c   : > { %2397 = vmatmul.mubr.bf16.gmra.mxu1 %v1368_v63 }
 0x35d   : > { %v2566_v61 = vpop.eup %2565 }
 0x35e   : > { %1214 = vadd.xlane.f32.xlu1 %v2566_v61  ;;  %v2568_v50 = vpop.eup %2567 }
 0x35f   : > { %v3272_v58 = vpop.eup %2569 }
 0x362   : > { %1210 = vadd.xlane.f32.xlu1 %v2568_v50 }
 0x373   : > { %1339 = vperm.xlu1 %2510, %v3272_v58  }
 0x37a   : > { %v1094_v9 = vpop.permute.xlu0 %1093 }
 0x37b   : > { %v1119_v44 = vsub.f32 %v3061_v7, %v1094_v9  ;;  %v1024_v7 = vmul.f32 1.442695, %v993_v24 }
 0x37d   : > { %v1148_v35 = vmul.f32 1.442695, %v1119_v44 }
 0x37e   : > { %v1104_v22 = vpop.permute.xlu0 %1103 }
 0x37f   : > { %2571 = vpow2.f32 %v1148_v35  ;;  %v1121_v12 = vsub.f32 %v3058_v1, %v1104_v22  ;;  %v3284_v1 = vpop.permute.xlu1 %1284  ;;  %v1155_v35 = vld [vmem:[#allocation3 + $0x8] sm:$0xff] }
 0x380   : > { %v1171_v34 = vmul.f32 %v3237_v38, %v1155_v35 }
 0x381   : > { %v1152_v56 = vmul.f32 1.442695, %v1121_v12 }
 0x382   : > { %v3286_v46 = vpop.permute.xlu0 %1274 }
 0x383   : > { %2573 = vpow2.f32 %v1152_v56  ;;  %v3288_v57 = vpop.permute.xlu1 %1289  ;;  %v1160_v56 = vld [vmem:[#allocation3 + $0x30] sm:$0xff] }
 0x384   : > { %2575 = vpow2.f32 %v1024_v7 }
 0x386   : > { %v3290_v0 = vpop.permute.xlu0 %1304 }
 0x387   : > { %v3295_v25 = vpop.permute.xlu1 %1299 }
 0x38a   : > { %v3297_v53 = vpop.permute.xlu0 %1294 }
 0x38b   : > { %v3299_v13 = vpop.permute.xlu1 %1319 }
 0x38c   : > { %v2572_v59 = vpop.eup %2571 }
 0x38d   : > { %v1369_v45 = vpack.c.bf16 %v2572_v59, %v2568_v50 }
 0x38e   : > { %v3301_v18 = vpop.permute.xlu0 %1324 }
 0x38f   : > { %2400 = vmatprep.mubr.bf16.mxu1 %v1369_v45  ;;  %v3303_v24 = vpop.permute.xlu1 %1309  ;;  %v1177_v45 = vmul.f32 %v3240_v14, %v1161_v62  ;;  %v1164_v14 = vld [vmem:[#allocation3 + $0x50] sm:$0xff] }
 0x390   : > { %v2574_v27 = vpop.eup %2573 }
 0x391   : > { %1216 = vadd.xlane.f32.xlu0 %v2574_v27  ;;  %v1370_v4 = vpack.c.bf16 %v2574_v27, %v2566_v61  ;;  %v3292_v21 = vpop.eup %2575  ;;  %v1157_v61 = vld [vmem:[#allocation3 + $0x18] sm:$0xff]  ;;  %v1176_v27 = vmul.f32 %v3199_v39, %v1160_v56 }
 0x392   : > { %v3305_v49 = vpop.permute.xlu0 %1314  ;;  %v1173_v9 = vmul.f32 %v3193_v8, %v1157_v61  ;;  %v1159_v8 = vld [vmem:[#allocation3 + $0x28] sm:$0xff]  ;;  %v1165_v61 = vld [vmem:[#allocation3 + $0x58] sm:$0xff] }
 0x393   : > { %2401 = vmatmul.mubr.bf16.gmra.mxu1 %v1370_v4  ;;  %v3307_v41 = vpop.permute.xlu1 %1329  ;;  %v1175_v38 = vmul.f32 %v3243_v54, %v1159_v8  ;;  %v1162_v54 = vld [vmem:[#allocation3 + $0x40] sm:$0xff] }
 0x394   : > { %v1178_v62 = vmul.f32 %v3205_v60, %v1162_v54  ;;  %v1258_v54 = vld [vmem:[#allocation4 + $0x38] sm:$0xff] }
 0x395   : > { %1212 = vadd.xlane.f32.xlu0 %v2572_v59 }
 0x396   : > { %v3309_v55 = vpop.permute.xlu0 %1334 }
 0x3ab   : > { %1344 = vperm.xlu0 %2509, %v3292_v21  }
 0x3c3   : > { %v1191_v10 = vpop.xlane.xlu0 %1190  ;;  %v1187_v63 = vpop.xlane.xlu1 %1186 }
 0x3c4   : > { %v1220_v50 = vadd.f32 %v1191_v10, %v1172_v42  ;;  %v1218_v43 = vadd.f32 %v1187_v63, %v1170_v15  ;;  %v1174_v15 = vmul.f32 %v3196_v11, %v1158_v29 }
 0x3c6   : > { %1237 = vst.msk [vmem:[#allocation3 + $0x10] sm:$0xff] %vm1234_vm6, %v1220_v50  ;;  %1235 = vst.msk [vmem:[#allocation3] sm:$0xff] %vm1234_vm6, %v1218_v43  ;;  %v1181_v43 = vmul.f32 %v3246_v31, %v1165_v61  ;;  %v1252_v61 = vld [vmem:[#allocation4 + $0x8] sm:$0xff] }
 0x3c7   : > { %v1193_v44 = vpop.xlane.xlu0 %1192 }
 0x3c8   : > { %v1221_v22 = vadd.f32 %v1193_v44, %v1173_v9  ;;  %v1180_v9 = vmul.f32 %v3202_v33, %v1164_v14  ;;  %v1168_v33 = vld [vmem:[#allocation3 + $0x70] sm:$0xff] }
 0x3ca   : > { %1238 = vst.msk [vmem:[#allocation3 + $0x18] sm:$0xff] %vm1234_vm6, %v1221_v22  ;;  %v1163_v22 = vld [vmem:[#allocation3 + $0x48] sm:$0xff] }
 0x3cb   : > { %v1189_v12 = vpop.xlane.xlu0 %1188 }
 0x3cc   : > { %v1219_v59 = vadd.f32 %v1189_v12, %v1171_v34  ;;  %v1179_v12 = vmul.f32 %v3249_v23, %v1163_v22 }
 0x3ce   : > { %1236 = vst.msk [vmem:[#allocation3 + $0x8] sm:$0xff] %vm1234_vm6, %v1219_v59 }
 0x3cf   : > { %v1201_v4 = vpop.xlane.xlu0 %1200  ;;  %v1199_v7 = vpop.xlane.xlu1 %1198 }
 0x3d0   : > { %v1225_v40 = vadd.f32 %v1201_v4, %v1177_v45  ;;  %v1224_v42 = vadd.f32 %v1199_v7, %v1176_v27  ;;  %v1184_v27 = vmul.f32 %v3272_v58, %v1168_v33  ;;  %v1166_v7 = vld [vmem:[#allocation3 + $0x60] sm:$0xff] }
 0x3d1   : > { %v1182_v23 = vmul.f32 %v3208_v20, %v1166_v7 }
 0x3d2   : > { %1242 = vst.msk [vmem:[#allocation3 + $0x38] sm:$0xff] %vm1234_vm6, %v1225_v40  ;;  %1241 = vst.msk [vmem:[#allocation3 + $0x30] sm:$0xff] %vm1234_vm6, %v1224_v42  ;;  %v1253_v40 = vld [vmem:[#allocation4 + $0x10] sm:$0xff]  ;;  %v1251_v42 = vld [vmem:[#allocation4] sm:$0xff] }
 0x3d3   : > { %v1197_v10 = vpop.xlane.xlu0 %1196  ;;  %v1195_v63 = vpop.xlane.xlu1 %1194  ;;  %v1347_v58 = vmul.f32 %v3277_v19, %v1251_v42 }
 0x3d4   : > { %v1223_v50 = vadd.f32 %v1197_v10, %v1175_v38  ;;  %v1222_v39 = vadd.f32 %v1195_v63, %v1174_v15  ;;  %v1349_v38 = vmul.f32 %v3282_v28, %v1253_v40  ;;  %v1254_v15 = vld [vmem:[#allocation4 + $0x18] sm:$0xff] }
 0x3d6   : > { %1240 = vst.msk [vmem:[#allocation3 + $0x28] sm:$0xff] %vm1234_vm6, %v1223_v50  ;;  %1239 = vst.msk [vmem:[#allocation3 + $0x20] sm:$0xff] %vm1234_vm6, %v1222_v39  ;;  %v1350_v50 = vmul.f32 %v3284_v1, %v1254_v15  ;;  %v1257_v39 = vld [vmem:[#allocation4 + $0x30] sm:$0xff] }
 0x3d7   : > { %v1209_v44 = vpop.xlane.xlu0 %1208  ;;  %v1207_v35 = vpop.xlane.xlu1 %1206  ;;  %v1353_v22 = vmul.f32 %v3295_v25, %v1257_v39  ;;  %v1263_v39 = vld [vmem:[#allocation4 + $0x60] sm:$0xff] }
 0x3d8   : > { %v1229_v34 = vadd.f32 %v1209_v44, %v1181_v43  ;;  %v1228_v11 = vadd.f32 %v1207_v35, %v1180_v9  ;;  %v1348_v9 = vmul.f32 %v3286_v46, %v1252_v61  ;;  %v1255_v44 = vld [vmem:[#allocation4 + $0x20] sm:$0xff]  ;;  %v1169_v46 = vld [vmem:[#allocation3 + $0x78] sm:$0xff] }
 0x3d9   : > { %v1351_v1 = vmul.f32 %v3288_v57, %v1255_v44  ;;  %v1185_v57 = vmul.f32 %v3292_v21, %v1169_v46 }
 0x3da   : > { %1246 = vst.msk [vmem:[#allocation3 + $0x58] sm:$0xff] %vm1234_vm6, %v1229_v34  ;;  %1245 = vst.msk [vmem:[#allocation3 + $0x50] sm:$0xff] %vm1234_vm6, %v1228_v11 }
 0x3db   : > { %v1205_v56 = vpop.xlane.xlu0 %1204  ;;  %v1203_v59 = vpop.xlane.xlu1 %1202 }
 0x3dc   : > { %v1227_v45 = vadd.f32 %v1205_v56, %v1179_v12  ;;  %v1226_v31 = vadd.f32 %v1203_v59, %v1178_v62  ;;  %v1256_v12 = vld [vmem:[#allocation4 + $0x28] sm:$0xff]  ;;  %v1354_v56 = vmul.f32 %v3290_v0, %v1258_v54 }
 0x3de   : > { %1244 = vst.msk [vmem:[#allocation3 + $0x48] sm:$0xff] %vm1234_vm6, %v1227_v45  ;;  %1243 = vst.msk [vmem:[#allocation3 + $0x40] sm:$0xff] %vm1234_vm6, %v1226_v31  ;;  %v1261_v45 = vld [vmem:[#allocation4 + $0x50] sm:$0xff]  ;;  %v1352_v31 = vmul.f32 %v3297_v53, %v1256_v12 }
 0x3e7   : > { %v1215_v4 = vpop.xlane.xlu1 %1214 }
 0x3e8   : > { %v1232_v8 = vadd.f32 %v1215_v4, %v1184_v27  ;;  %v1259_v27 = vld [vmem:[#allocation4 + $0x40] sm:$0xff] }
 0x3e9   : > { %v1355_v42 = vmul.f32 %v3303_v24, %v1259_v27 }
 0x3ea   : > { %1249 = vst.msk [vmem:[#allocation3 + $0x70] sm:$0xff] %vm1234_vm6, %v1232_v8  ;;  %v1167_v8 = vld [vmem:[#allocation3 + $0x68] sm:$0xff] }
 0x3eb   : > { %v1211_v29 = vpop.xlane.xlu1 %1210  ;;  %v1183_v21 = vmul.f32 %v3252_v37, %v1167_v8 }
 0x3ec   : > { %v1230_v60 = vadd.f32 %v1211_v29, %v1182_v23  ;;  %v1357_v23 = vmul.f32 %v3299_v13, %v1261_v45 }
 0x3ee   : > { %1247 = vst.msk [vmem:[#allocation3 + $0x60] sm:$0xff] %vm1234_vm6, %v1230_v60  ;;  %v1262_v60 = vld [vmem:[#allocation4 + $0x58] sm:$0xff] }
 0x3ef   : > { %v1358_v13 = vmul.f32 %v3301_v18, %v1262_v60  ;;  %v1340_v18 = vpop.permute.xlu1 %1339 }
 0x40c   : > { %v2390_v10 = vpop.f32.mrf.mxu1 }
 0x40d   : > { %v1502_v63 = vadd.f32 %v2390_v10, %v1349_v38  ;;  %v1260_v38 = vld [vmem:[#allocation4 + $0x48] sm:$0xff] }
 0x40e   : > { %v1437_v14 = vpop.f32.mrf.mxu1 }
 0x40f   : > { %1519 = vst.msk [vmem:[#allocation4 + $0x10] sm:$0xff] %vm1516_vm7, %v1502_v63  ;;  %v1500_v20 = vadd.f32 %v1437_v14, %v1347_v58  ;;  %v1356_v14 = vmul.f32 %v3305_v49, %v1260_v38  ;;  %v1359_v49 = vmul.f32 %v3307_v41, %v1263_v39 }
 0x410   : > { %v2391_v43 = vpop.f32.mrf.mxu1 }
 0x411   : > { %1517 = vst.msk [vmem:[#allocation4] sm:$0xff] %vm1516_vm7, %v1500_v20  ;;  %v1503_v28 = vadd.f32 %v2391_v43, %v1350_v50  ;;  %v1265_v20 = vld [vmem:[#allocation4 + $0x70] sm:$0xff] }
 0x412   : > { %v1440_v35 = vpop.f32.mrf.mxu1  ;;  %v1361_v43 = vmul.f32 %v1340_v18, %v1265_v20 }
 0x413   : > { %1520 = vst.msk [vmem:[#allocation4 + $0x18] sm:$0xff] %vm1516_vm7, %v1503_v28  ;;  %v1501_v19 = vadd.f32 %v1440_v35, %v1348_v9  ;;  %v1266_v9 = vld [vmem:[#allocation4 + $0x78] sm:$0xff] }
 0x414   : > { %v2394_v34 = vpop.f32.mrf.mxu1 }
 0x415   : > { %1518 = vst.msk [vmem:[#allocation4 + $0x8] sm:$0xff] %vm1516_vm7, %v1501_v19  ;;  %v1506_v11 = vadd.f32 %v2394_v34, %v1353_v22  ;;  %v1264_v22 = vld [vmem:[#allocation4 + $0x68] sm:$0xff] }
 0x416   : > { %v1453_v62 = vpop.f32.mrf.mxu1 }
 0x417   : > { %1523 = vst.msk [vmem:[#allocation4 + $0x30] sm:$0xff] %vm1516_vm7, %v1506_v11  ;;  %v1504_v59 = vadd.f32 %v1453_v62, %v1351_v1  ;;  %v1360_v11 = vmul.f32 %v3309_v55, %v1264_v22 }
 0x418   : > { %v2395_v25 = vpop.f32.mrf.mxu1 }
 0x419   : > { %1521 = vst.msk [vmem:[#allocation4 + $0x20] sm:$0xff] %vm1516_vm7, %v1504_v59  ;;  %v1507_v33 = vadd.f32 %v2395_v25, %v1354_v56 }
 0x41a   : > { %v1217_v4 = vpop.xlane.xlu0 %1216  ;;  %v1456_v7 = vpop.f32.mrf.mxu1 }
 0x41b   : > { %1524 = vst.msk [vmem:[#allocation4 + $0x38] sm:$0xff] %vm1516_vm7, %v1507_v33  ;;  %v1233_v0 = vadd.f32 %v1217_v4, %v1185_v57  ;;  %v1505_v29 = vadd.f32 %v1456_v7, %v1352_v31 }
 0x41c   : > { %v2398_v40 = vpop.f32.mrf.mxu1 }
 0x41d   : > { %1250 = vst.msk [vmem:[#allocation3 + $0x78] sm:$0xff] %vm1234_vm6, %v1233_v0  ;;  %v1510_v53 = vadd.f32 %v2398_v40, %v1357_v23 }
 0x41e   : > { %1522 = vst.msk [vmem:[#allocation4 + $0x28] sm:$0xff] %vm1516_vm7, %v1505_v29  ;;  %v1213_v15 = vpop.xlane.xlu0 %1212  ;;  %v1469_v10 = vpop.f32.mrf.mxu1 }
 0x41f   : > { %1527 = vst.msk [vmem:[#allocation4 + $0x50] sm:$0xff] %vm1516_vm7, %v1510_v53  ;;  %v1231_v58 = vadd.f32 %v1213_v15, %v1183_v21  ;;  %v1508_v63 = vadd.f32 %v1469_v10, %v1355_v42 }
 0x420   : > { %v2399_v61 = vpop.f32.mrf.mxu1 }
 0x421   : > { %1248 = vst.msk [vmem:[#allocation3 + $0x68] sm:$0xff] %vm1234_vm6, %v1231_v58  ;;  %v1511_v24 = vadd.f32 %v2399_v61, %v1358_v13 }
 0x422   : > { %1525 = vst.msk [vmem:[#allocation4 + $0x40] sm:$0xff] %vm1516_vm7, %v1508_v63  ;;  %v1472_v50 = vpop.f32.mrf.mxu1 }
 0x423   : > { %1528 = vst.msk [vmem:[#allocation4 + $0x58] sm:$0xff] %vm1516_vm7, %v1511_v24  ;;  %v1509_v37 = vadd.f32 %v1472_v50, %v1356_v14 }
 0x425   : > { %1526 = vst.msk [vmem:[#allocation4 + $0x48] sm:$0xff] %vm1516_vm7, %v1509_v37 }
 0x426   : > { %v1345_v28 = vpop.permute.xlu0 %1344 }
 0x427   : > { %v1362_v54 = vmul.f32 %v1345_v28, %v1266_v9 }
 0x453   : > { %v2402_v44 = vpop.f32.mrf.mxu1 }
 0x454   : > { %v1514_v35 = vadd.f32 %v2402_v44, %v1361_v43 }
 0x455   : > { %v1485_v19 = vpop.f32.mrf.mxu1 }
 0x456   : > { %1531 = vst.msk [vmem:[#allocation4 + $0x70] sm:$0xff] %vm1516_vm7, %v1514_v35  ;;  %v1512_v34 = vadd.f32 %v1485_v19, %v1359_v49 }
 0x457   : > { %v2403_v1 = vpop.f32.mrf.mxu1 }
 0x458   : > { %1529 = vst.msk [vmem:[#allocation4 + $0x60] sm:$0xff] %vm1516_vm7, %v1512_v34  ;;  %v1515_v12 = vadd.f32 %v2403_v1, %v1362_v54  ;;  %1593 = sbr.rel (%p2226_p10) target bundleno = 1560 (0x618), region = 60 }
 0x459   : > { %v1488_v62 = vpop.f32.mrf.mxu1 }
 0x45a   : > { %1532 = vst.msk [vmem:[#allocation4 + $0x78] sm:$0xff] %vm1516_vm7, %v1515_v12  ;;  %v1513_v46 = vadd.f32 %v1488_v62, %v1360_v11 }
 0x45c   : > { %1530 = vst.msk [vmem:[#allocation4 + $0x68] sm:$0xff] %vm1516_vm7, %v1513_v46 }
 0x45d   : > { %v1750_v41 = vld [vmem:[%s3482_s5 + $0x8] sm:$0xff]  ;;  %v1749_v55 = vld [vmem:[%s3482_s5] sm:$0xff]  ;;  %v2675_v59 = vmov 0.0   ;;  %vm2676_vm8 = vmmov 0   ;;  %v1600_v25 = vld [vmem:[#allocation3 + $0x30] sm:$0xff]  ;;  %v2677_v57 = vmov 0  }
 0x45e   : > { %v1747_v56 = vld [vmem:[#allocation5] sm:$0x1]  ;;  %2404 = vmatprep.subr.mxu0 %v2675_v59  ;;  %2408 = vmatprep.mubr.msk.f32.mxu0 %vm2676_vm8, %v2675_v59  ;;  %v1601_v33 = vld [vmem:[#allocation3 + $0x38] sm:$0xff]  ;;  %2579 = vrcp.f32 %v1600_v25  ;;  %v1599_v27 = vld [vmem:[#allocation3 + $0x28] sm:$0xff]  ;;  %vm1954_vm9 = vcmask 1043456   ;;  %vm1830_vm10 = vcmask 1041408  }
 0x45f   : > { %v1748_v45 = vmul.f32 0.00390625, %v1747_v56  ;;  %v1598_v31 = vld [vmem:[#allocation3 + $0x20] sm:$0xff]  ;;  %2405 = vmatpush3.msra.mxu0 %v1750_v41  ;;  %2578 = vset.pattern.permute.xlu1 %v2677_v57  ;;  %v1603_v4 = vld [vmem:[#allocation3 + $0x48] sm:$0xff]  ;;  %v1605_v8 = vld [vmem:[#allocation3 + $0x58] sm:$0xff] }
 0x460   : > { %2406 = vmatprep.subr.mxu0 %v2675_v59  ;;  %2577 = vset.pattern.permute.xlu0 %v2677_v57  ;;  %2581 = vrcp.f32 %v1598_v31  ;;  %v1602_v7 = vld [vmem:[#allocation3 + $0x40] sm:$0xff]  ;;  %v1604_v23 = vld [vmem:[#allocation3 + $0x50] sm:$0xff]  ;;  %v1595_v0 = vld [vmem:[#allocation3 + $0x8] sm:$0xff] }
 0x461   : > { %2407 = vmatpush3.msra.mxu0 %v1749_v55  ;;  %2583 = vrcp.f32 %v1601_v33  ;;  %v1594_v29 = vld [vmem:[#allocation3] sm:$0xff]  ;;  %v1607_v53 = vld [vmem:[#allocation3 + $0x68] sm:$0xff]  ;;  %v1597_v10 = vld [vmem:[#allocation3 + $0x18] sm:$0xff] }
 0x462   : > { %2409 = vmatmul.mubr.msk.f32.vlgmr.msra.gmra.mxu0 %vm501_vm3, %v1748_v45  ;;  %2585 = vrcp.f32 %v1599_v27  ;;  %2411 = vmatprep.subr.mxu0 %v2675_v59  ;;  %v1606_v38 = vld [vmem:[#allocation3 + $0x60] sm:$0xff]  ;;  %v1596_v58 = vld [vmem:[#allocation3 + $0x10] sm:$0xff]  ;;  %v1609_v61 = vld [vmem:[#allocation3 + $0x78] sm:$0xff] }
 0x463   : > { %2413 = vmatprep.mubr.msk.f32.mxu0 %vm2676_vm8, %v2675_v59  ;;  %2587 = vrcp.f32 %v1603_v4  ;;  %v1608_v24 = vld [vmem:[#allocation3 + $0x70] sm:$0xff]  ;;  %v1746_v50 = vld [vmem:[%s3481_s4] sm:$0xf]  ;;  %v1633_v1 = vld [vmem:[#allocation4 + $0x38] sm:$0xff] }
 0x464   : > { %2589 = vrcp.f32 %v1602_v7  ;;  %2445 = vmatprep.subr.msk.bf16.mxu1 %vm1954_vm9, %v1746_v50  ;;  %v3388_v37 = vsel %vm1954_vm9, %v1746_v50, 0  ;;  %v1826_v35 = vld [vmem:[%s3484_s7] sm:$0x3]  ;;  %v1632_v22 = vld [vmem:[#allocation4 + $0x30] sm:$0xff]  ;;  %v1631_v12 = vld [vmem:[#allocation4 + $0x28] sm:$0xff] }
 0x465   : > { %2591 = vrcp.f32 %v1605_v8  ;;  %2435 = vmatpush3.bf16.msra.mxu1 %v3388_v37  ;;  %2412 = vmatpush3.msk.msra.mxu0 %vm1830_vm10, %v1826_v35  ;;  %v1630_v54 = vld [vmem:[#allocation4 + $0x20] sm:$0xff]  ;;  %v1635_v59 = vld [vmem:[#allocation4 + $0x48] sm:$0xff]  ;;  %v1637_v7 = vld [vmem:[#allocation4 + $0x58] sm:$0xff] }
 0x466   : > { %2593 = vrcp.f32 %v1604_v23  ;;  %2444 = vmatprep.subr.msk.bf16.mxu0 %vm1954_vm9, %v1746_v50  ;;  %v1634_v25 = vld [vmem:[#allocation4 + $0x40] sm:$0xff]  ;;  %v1636_v8 = vld [vmem:[#allocation4 + $0x50] sm:$0xff]  ;;  %v1641_v50 = vld [vmem:[#allocation4 + $0x78] sm:$0xff] }
 0x467   : > { %2595 = vrcp.f32 %v1595_v0 }
 0x468   : > { %2597 = vrcp.f32 %v1594_v29 }
 0x469   : > { %2599 = vrcp.f32 %v1607_v53 }
 0x46a   : > { %2601 = vrcp.f32 %v1606_v38  ;;  %v1639_v38 = vld [vmem:[#allocation4 + $0x68] sm:$0xff] }
 0x46b   : > { %v2580_v60 = vpop.eup %2579  ;;  %2603 = vrcp.f32 %v1597_v10 }
 0x46c   : > { %1674 = vperm.xlu1 %2578, %v2580_v60   ;;  %2605 = vrcp.f32 %v1596_v58 }
 0x46d   : > { %v2582_v40 = vpop.eup %2581  ;;  %2607 = vrcp.f32 %v1609_v61 }
 0x46e   : > { %v2584_v42 = vpop.eup %2583  ;;  %1664 = vperm.xlu0 %2577, %v2582_v40   ;;  %2609 = vrcp.f32 %v1608_v24 }
 0x46f   : > { %v2586_v21 = vpop.eup %2585 }
 0x470   : > { %1679 = vperm.xlu1 %2578, %v2584_v42   ;;  %v2588_v15 = vpop.eup %2587 }
 0x471   : > { %v2590_v13 = vpop.eup %2589 }
 0x472   : > { %1669 = vperm.xlu0 %2577, %v2586_v21   ;;  %v2592_v63 = vpop.eup %2591 }
 0x473   : > { %v2594_v14 = vpop.eup %2593 }
 0x474   : > { %1689 = vperm.xlu1 %2578, %v2588_v15   ;;  %v2596_v20 = vpop.eup %2595  ;;  %v1638_v15 = vld [vmem:[#allocation4 + $0x60] sm:$0xff] }
 0x475   : > { %v2598_v18 = vpop.eup %2597 }
 0x476   : > { %1684 = vperm.xlu0 %2577, %v2590_v13   ;;  %v2600_v39 = vpop.eup %2599 }
 0x477   : > { %v2602_v43 = vpop.eup %2601 }
 0x478   : > { %1699 = vperm.xlu1 %2578, %v2592_v63   ;;  %v2604_v9 = vpop.eup %2603 }
 0x479   : > { %v2606_v28 = vpop.eup %2605 }
 0x47a   : > { %1694 = vperm.xlu0 %2577, %v2594_v14   ;;  %v2608_v44 = vpop.eup %2607 }
 0x47b   : > { %v2610_v49 = vpop.eup %2609 }
 0x47c   : > { %1649 = vperm.xlu1 %2578, %v2596_v20   ;;  %v1640_v20 = vld [vmem:[#allocation4 + $0x70] sm:$0xff] }
 0x47e   : > { %1644 = vperm.xlu0 %2577, %v2598_v18  }
 0x480   : > { %1709 = vperm.xlu1 %2578, %v2600_v39  }
 0x482   : > { %1704 = vperm.xlu0 %2577, %v2602_v43  }
 0x484   : > { %1659 = vperm.xlu1 %2578, %v2604_v9  }
 0x486   : > { %1654 = vperm.xlu0 %2577, %v2606_v28  }
 0x488   : > { %1719 = vperm.xlu1 %2578, %v2608_v44   ;;  %v1627_v44 = vld [vmem:[#allocation4 + $0x8] sm:$0xff] }
 0x48a   : > { %1714 = vperm.xlu0 %2577, %v2610_v49   ;;  %v1626_v49 = vld [vmem:[#allocation4] sm:$0xff] }
 0x4e7   : > { %v1675_v19 = vpop.permute.xlu1 %1674 }
 0x4e8   : > { %v1728_v11 = vmul.f32 %v1675_v19, %v1632_v22  ;;  %v1629_v19 = vld [vmem:[#allocation4 + $0x18] sm:$0xff] }
 0x4e9   : > { %v1665_v34 = vpop.permute.xlu0 %1664 }
 0x4ea   : > { %v1726_v62 = vmul.f32 %v1665_v34, %v1630_v54  ;;  %v1628_v54 = vld [vmem:[#allocation4 + $0x10] sm:$0xff]  ;;  %v1751_v34 = vld [vmem:[%s3483_s6] sm:$0x1] }
 0x4eb   : > { %v1680_v46 = vpop.permute.xlu1 %1679 }
 0x4ec   : > { %v1729_v41 = vmul.f32 %v1680_v46, %v1633_v1 }
 0x4ed   : > { %v1670_v55 = vpop.permute.xlu0 %1669 }
 0x4ee   : > { %v1727_v56 = vmul.f32 %v1670_v55, %v1631_v12  ;;  %v1741_v45 = vpack.c.bf16 %v1729_v41, %v1728_v11 }
 0x4ef   : > { %v1690_v31 = vpop.permute.xlu1 %1689 }
 0x4f0   : > { %v1740_v33 = vpack.c.bf16 %v1727_v56, %v1726_v62  ;;  %v1731_v57 = vmul.f32 %v1690_v31, %v1635_v59 }
 0x4f1   : > { %v1685_v27 = vpop.permute.xlu0 %1684 }
 0x4f2   : > { %v1730_v4 = vmul.f32 %v1685_v27, %v1634_v25  ;;  %2422 = vmatprep.mubr.msk.bf16.mxu1 %vm1516_vm7, %v1740_v33 }
 0x4f3   : > { %2423 = vmatmul.mubr.msk.bf16.vlgmr.msra.gmra.mxu1 %vm1516_vm7, %v1741_v45  ;;  %v1700_v0 = vpop.permute.xlu1 %1699 }
 0x4f4   : > { %v1742_v23 = vpack.c.bf16 %v1731_v57, %v1730_v4  ;;  %v1733_v29 = vmul.f32 %v1700_v0, %v1637_v7 }
 0x4f5   : > { %v1695_v60 = vpop.permute.xlu0 %1694 }
 0x4f6   : > { %v1732_v40 = vmul.f32 %v1695_v60, %v1636_v8  ;;  %2426 = vmatprep.mubr.msk.bf16.mxu1 %vm1516_vm7, %v1742_v23 }
 0x4f7   : > { %v1650_v53 = vpop.permute.xlu1 %1649 }
 0x4f8   : > { %v1743_v42 = vpack.c.bf16 %v1733_v29, %v1732_v40  ;;  %v1723_v35 = vmul.f32 %v1650_v53, %v1627_v44 }
 0x4f9   : > { %v1645_v21 = vpop.permute.xlu0 %1644 }
 0x4fa   : > { %v1722_v22 = vmul.f32 %v1645_v21, %v1626_v49 }
 0x4fb   : > { %2427 = vmatmul.mubr.msk.bf16.gmra.mxu1 %vm1516_vm7, %v1743_v42  ;;  %v1710_v10 = vpop.permute.xlu1 %1709 }
 0x4fc   : > { %v1735_v13 = vmul.f32 %v1710_v10, %v1639_v38  ;;  %v1738_v46 = vpack.c.bf16 %v1723_v35, %v1722_v22 }
 0x4fd   : > { %v1705_v58 = vpop.permute.xlu0 %1704 }
 0x4fe   : > { %v1734_v63 = vmul.f32 %v1705_v58, %v1638_v15 }
 0x4ff   : > { %v1660_v14 = vpop.permute.xlu1 %1659 }
 0x500   : > { %v1744_v61 = vpack.c.bf16 %v1735_v13, %v1734_v63  ;;  %v1725_v11 = vmul.f32 %v1660_v14, %v1629_v19  ;;  %v3496_v19 = vld [vmem:[#allocation9_spill] sm:$0xff] }
 0x501   : > { %v1655_v24 = vpop.permute.xlu0 %1654 }
 0x502   : > { %2430 = vmatprep.mubr.msk.bf16.mxu1 %vm1516_vm7, %v1744_v61  ;;  %v1724_v12 = vmul.f32 %v1655_v24, %v1628_v54 }
 0x503   : > { %v1720_v18 = vpop.permute.xlu1 %1719 }
 0x504   : > { %v1737_v39 = vmul.f32 %v1720_v18, %v1641_v50  ;;  %v1739_v56 = vpack.c.bf16 %v1725_v11, %v1724_v12 }
 0x505   : > { %v1715_v43 = vpop.permute.xlu0 %1714 }
 0x506   : > { %v1736_v9 = vmul.f32 %v1715_v43, %v1640_v20 }
 0x508   : > { %v1745_v28 = vpack.c.bf16 %v1737_v39, %v1736_v9 }
 0x50a   : > { %2431 = vmatmul.mubr.msk.bf16.gmra.mxu1 %vm1516_vm7, %v1745_v28 }
 0x522   : > { %v1821_v1 = vpop.f32.mrf.mxu0 }
 0x523   : > { %v1822_v62 = vadd.f32 %v1821_v1, %v1751_v34 }
 0x524   : > { %v2410_v41 = vpop.f32.mrf.mxu0 }
 0x525   : > { %v1825_v55 = vmax.f32 %v1822_v62, 0.0 }
 0x527   : > { %2414 = vmatmul.mubr.msk.f32.vlgmr.msra.gmra.mxu0 %vm768_vm5, %v1825_v55 }
 0x528   : > { %2417 = vmatpush3.bf16.msra.mxu0 %v3388_v37  ;;  %2418 = vmatprep.mubr.msk.bf16.mxu0 %vm1516_vm7, %v1738_v46  ;;  %v1910_v37 = vlaneseq }
 0x52a   : > { %v1911_v40 = vshrl.u32 %v1910_v37, 7 }
 0x52b   : > { %2419 = vmatmul.mubr.msk.bf16.vlgmr.msra.gmra.mxu0 %vm1516_vm7, %v1739_v56 }
 0x52c   : > { %v1912_v53 = vsub.s32 0, %v1911_v40 }
 0x5b3   : > { %v2424_v59 = vpop.f32.mrf.mxu1 }
 0x5b5   : > { %v2008_v33 = vpop.f32.mrf.mxu1 }
 0x5b7   : > { %v2425_v27 = vpop.f32.mrf.mxu1 }
 0x5b9   : > { %v2011_v4 = vpop.f32.mrf.mxu1 }
 0x5bb   : > { %v2428_v7 = vpop.f32.mrf.mxu1 }
 0x5bd   : > { %v2024_v23 = vpop.f32.mrf.mxu1 }
 0x5bf   : > { %v2429_v29 = vpop.f32.mrf.mxu1 }
 0x5c1   : > { %v2027_v60 = vpop.f32.mrf.mxu1 }
 0x5ca   : > { %v2432_v42 = vpop.f32.mrf.mxu1 }
 0x5cc   : > { %v2040_v10 = vpop.f32.mrf.mxu1 }
 0x5e7   : > { %v1900_v45 = vpop.f32.mrf.mxu0 }
 0x5e8   : > { %v1904_v25 = vsub.f32 0.0, %v1900_v45 }
 0x5e9   : > { %v2415_v31 = vpop.f32.mrf.mxu0 }
 0x5ea   : > { %v1905_v57 = vmul.f32 1.442695, %v1904_v25 }
 0x5eb   : > { %v2420_v21 = vpop.f32.mrf.mxu0 }
 0x5ec   : > { %2611 = vpow2.f32 %v1905_v57 }
 0x5ed   : > { %v1992_v13 = vpop.f32.mrf.mxu0 }
 0x5ef   : > { %v2421_v28 = vpop.f32.mrf.mxu0 }
 0x5f1   : > { %v1995_v62 = vpop.f32.mrf.mxu0 }
 0x5f9   : > { %v2612_v8 = vpop.eup %2611 }
 0x5fa   : > { %v1907_v0 = vadd.f32 1.0, %v2612_v8 }
 0x5fc   : > { %2613 = vrcp.f32 %v1907_v0 }
 0x609   : > { %v2614_v38 = vpop.eup %2613 }
 0x60a   : > { %v1913_v15 = vrot.slane %v2614_v38, %v1912_v53 }
 0x60c   : > { %v1918_v58 = vmul.f32 %v1913_v15, %v2872_v32  ;;  %v1919_v63 = vmul.f32 %v1913_v15, %v2878_v36  ;;  %v1920_v61 = vmul.f32 %v1913_v15, %v2893_v47  ;;  %v1921_v14 = vmul.f32 %v1913_v15, %v2896_v48  ;;  %v2433_v48 = vpop.f32.mrf.mxu1 }
 0x60d   : > { %v1922_v24 = vmul.f32 %v1913_v15, %v2901_v51  ;;  %v1923_v50 = vmul.f32 %v1913_v15, %v2904_v52  ;;  %v1924_v20 = vmul.f32 %v1913_v15, %v2920_v2  ;;  %v1925_v18 = vmul.f32 %v1913_v15, %v2923_v3 }
 0x60e   : > { %v1928_v39 = vmul.f32 %v1913_v15, %v2942_v16  ;;  %v2009_v32 = vadd.f32 %v2008_v33, %v1918_v58  ;;  %v2017_v36 = vadd.f32 %v2424_v59, %v1920_v61  ;;  %v2012_v47 = vadd.f32 %v2011_v4, %v1919_v63  ;;  %v2043_v34 = vpop.f32.mrf.mxu1 }
 0x60f   : > { %v2020_v51 = vadd.f32 %v2425_v27, %v1921_v14  ;;  %v2025_v43 = vadd.f32 %v2024_v23, %v1922_v24  ;;  %v2033_v9 = vadd.f32 %v2428_v7, %v1924_v20  ;;  %v2028_v52 = vadd.f32 %v2027_v60, %v1923_v50 }
 0x610   : > { %v2036_v2 = vadd.f32 %v2429_v29, %v1925_v18  ;;  %v2049_v44 = vadd.f32 %v2432_v42, %v1928_v39  ;;  %2059 = vst.msk [vmem:[%s2776_s25 + $0x20] sm:$0xff] %vm501_vm3, %v2009_v32  ;;  %2060 = vst.msk [vmem:[%s2776_s25 + $0x28] sm:$0xff] %vm501_vm3, %v2012_v47  ;;  %v1926_v3 = vmul.f32 %v1913_v15, %v2927_v5 }
 0x611   : > { %2061 = vst.msk [vmem:[%s2776_s25 + $0x30] sm:$0xff] %vm501_vm3, %v2017_v36  ;;  %v1929_v16 = vmul.f32 %v1913_v15, %v2945_v17  ;;  %2062 = vst.msk [vmem:[%s2776_s25 + $0x38] sm:$0xff] %vm501_vm3, %v2020_v51  ;;  %v1916_v49 = vmul.f32 %v1913_v15, %v2866_v30  ;;  %v1927_v35 = vmul.f32 %v1913_v15, %v2930_v6  ;;  %v3497_v30 = vld [vmem:[#allocation8_spill] sm:$0xff] }
 0x612   : > { %2063 = vst.msk [vmem:[%s2776_s25 + $0x40] sm:$0xff] %vm501_vm3, %v2025_v43  ;;  %2064 = vst.msk [vmem:[%s2776_s25 + $0x48] sm:$0xff] %vm501_vm3, %v2028_v52  ;;  %v1914_v22 = vmul.f32 %v1913_v15, %v2858_v26  ;;  %v1917_v5 = vmul.f32 %v1913_v15, %v3496_v19  ;;  %v2041_v17 = vadd.f32 %v2040_v10, %v1926_v3 }
 0x613   : > { %2065 = vst.msk [vmem:[%s2776_s25 + $0x50] sm:$0xff] %vm501_vm3, %v2033_v9  ;;  %2066 = vst.msk [vmem:[%s2776_s25 + $0x58] sm:$0xff] %vm501_vm3, %v2036_v2  ;;  %v2052_v54 = vadd.f32 %v2433_v48, %v1929_v16  ;;  %v1915_v1 = vmul.f32 %v1913_v15, %v3497_v30  ;;  %v2001_v11 = vadd.f32 %v2420_v21, %v1916_v49 }
 0x614   : > { %2069 = vst.msk [vmem:[%s2776_s25 + $0x70] sm:$0xff] %vm501_vm3, %v2049_v44  ;;  %v2044_v6 = vadd.f32 %v2043_v34, %v1927_v35  ;;  %v1993_v12 = vadd.f32 %v1992_v13, %v1914_v22  ;;  %v2004_v26 = vadd.f32 %v2421_v28, %v1917_v5  ;;  %2067 = vst.msk [vmem:[%s2776_s25 + $0x60] sm:$0xff] %vm501_vm3, %v2041_v17 }
 0x615   : > { %2070 = vst.msk [vmem:[%s2776_s25 + $0x78] sm:$0xff] %vm501_vm3, %v2052_v54  ;;  %v1996_v46 = vadd.f32 %v1995_v62, %v1915_v1  ;;  %2057 = vst.msk [vmem:[%s2776_s25 + $0x10] sm:$0xff] %vm501_vm3, %v2001_v11 }
 0x616   : > { %2068 = vst.msk [vmem:[%s2776_s25 + $0x68] sm:$0xff] %vm501_vm3, %v2044_v6  ;;  %2055 = vst.msk [vmem:[%s2776_s25] sm:$0xff] %vm501_vm3, %v1993_v12 }
 0x617   : > { %2058 = vst.msk [vmem:[%s2776_s25 + $0x18] sm:$0xff] %vm501_vm3, %v2004_v26  ;;  %2056 = vst.msk [vmem:[%s2776_s25 + $0x8] sm:$0xff] %vm501_vm3, %v1996_v46 }
 0x618 PF: > { %s18_s11 = sadd.s32 1, %s2669_s11   ;;  %s3498_s13 = sld [smem:[#allocation6_spill]] }
 0x619   : > { %p15_p11 = scmp.ge.s32.totalorder %s18_s11, 10   ;;  %s3499_s14 = sld [smem:[#allocation7_spill]] }
 0x61a   : > { %s3500_s27 = smov %s2657_s30  ;;  %s3501_s28 = smov %s2661_s9 }
 0x61b   : > { %s3502_s29 = smov %s2665_s10  ;;  %s3503_s30 = smov %s3507_s12 }
 0x61c   :  { %17 = sbr.rel (!%p15_p11) target bundleno = 4 (0x4), region = 93 }
 0x61e   : > { %s3504_s9 = smov %s3498_s13 }
 0x61f   : > { %s3505_s10 = smov %s3499_s14 }

</bundles_post_ra>
